<compile_context>
chip_gen: v7x
topology: tpu7x:2x2x1
jax: 0.10.0
libtpu: 0.0.40
codegen_flags: <defaults>
</compile_context>

<pallas_src>
import math

import jax
import jax.numpy as jnp
from jax.experimental import pallas as pl
from jax.experimental.pallas import tpu as pltpu

EPS = 1e-5


# ----------------------------------------------------------------------------
# Pallas kernel: one ResNetBasicBlock for ONE sample (grid iterates over N).
# ----------------------------------------------------------------------------
def make_block_kernel(*, H, W, H_out, W_out, C_in, C_out, stride, has_shortcut):
    L = H_out * W_out
    HP1, WP1 = H + 2, W + 2            # conv1 padded extent (stride-1 path)
    HP2, WP2 = H_out + 2, W_out + 2    # conv2 padded extent
    in_kernel_pad = (stride == 1)

    def kernel(*refs):
        it = iter(refs)
        x_ref = next(it)
        w1_ref = next(it)
        w2_ref = next(it)
        if has_shortcut:
            ws_ref = next(it)
            scale_ref = next(it)
            shift_ref = next(it)
        out_ref = next(it)
        if in_kernel_pad:
            xpad_ref = next(it)
        ypad_ref = next(it)
        acc_ref = next(it)

        # ---- conv1 input ----
        if in_kernel_pad:
            # Build the 1-px zero halo in VMEM (strips only, interior written once)
            # instead of materializing a padded activation copy in HBM.
            zr1 = jnp.zeros((1, WP1, C_in), jnp.float32)
            zc1 = jnp.zeros((HP1, 1, C_in), jnp.float32)
            xpad_ref[0:1, :, :] = zr1
            xpad_ref[HP1 - 1:HP1, :, :] = zr1
            xpad_ref[:, 0:1, :] = zc1
            xpad_ref[:, WP1 - 1:WP1, :] = zc1
            xpad_ref[1:1 + H, 1:1 + W, :] = x_ref[0].astype(jnp.float32)

            def conv1_window(kh, kw):
                return xpad_ref[kh:kh + H_out, kw:kw + W_out, :]
        else:
            # Stride-2: wrapper-built 4-phase decomposition -> every tap is a
            # unit-stride slice of a phase that is already resident in VMEM.
            def conv1_window(kh, kw):
                p = (kh % stride) * stride + (kw % stride)   # phase index
                oh, ow = kh // stride, kw // stride           # offset inside phase
                return x_ref[p, oh:oh + H_out, ow:ow + W_out, :]

        def conv3x3(window_fn, w_ref, cin):
            # 9 shifted (L, cin) x (cin, C_out) MXU matmuls, bf16 operands with f32
            # accumulation into a VMEM scratch (bounds live ranges of big temporaries).
            for t, (kh, kw) in enumerate((a, b) for a in range(3) for b in range(3)):
                win = window_fn(kh, kw).reshape(L, cin).astype(jnp.bfloat16)
                contrib = jnp.dot(win, w_ref[kh, kw],
                                  preferred_element_type=jnp.float32)
                if t == 0:
                    acc_ref[...] = contrib
                else:
                    acc_ref[...] += contrib
            return acc_ref[...]

        # ---- conv1 -> InstanceNorm (per-sample spatial stats) -> ReLU ----
        acc1 = conv3x3(conv1_window, w1_ref, C_in)
        m1 = jnp.mean(acc1, axis=0, keepdims=True)
        v1 = jnp.mean(acc1 * acc1, axis=0, keepdims=True) - m1 * m1
        y1 = jnp.maximum((acc1 - m1) * jax.lax.rsqrt(v1 + EPS), 0.0)

        # ---- conv2 input: 1-px zero halo in VMEM scratch ----
        zr2 = jnp.zeros((1, WP2, C_out), jnp.float32)
        zc2 = jnp.zeros((HP2, 1, C_out), jnp.float32)
        ypad_ref[0:1, :, :] = zr2
        ypad_ref[HP2 - 1:HP2, :, :] = zr2
        ypad_ref[:, 0:1, :] = zc2
        ypad_ref[:, WP2 - 1:WP2, :] = zc2
        ypad_ref[1:1 + H_out, 1:1 + W_out, :] = y1.reshape(H_out, W_out, C_out)

        def conv2_window(kh, kw):
            return ypad_ref[kh:kh + H_out, kw:kw + W_out, :]

        # ---- conv2 -> InstanceNorm ----
        acc2 = conv3x3(conv2_window, w2_ref, C_out)
        m2 = jnp.mean(acc2, axis=0, keepdims=True)
        v2 = jnp.mean(acc2 * acc2, axis=0, keepdims=True) - m2 * m2
        y2 = (acc2 - m2) * jax.lax.rsqrt(v2 + EPS)

        # ---- residual (input already resident in VMEM, no extra HBM read) ----
        if has_shortcut:
            if in_kernel_pad:
                xs = x_ref[0].reshape(L, C_in)
            else:
                pc = (1 % stride) * stride + (1 % stride)     # center-tap phase
                oc = 1 // stride
                xs = x_ref[pc, oc:oc + H_out, oc:oc + W_out, :].reshape(L, C_in)
            # 1x1 conv in bf16 (f32 acc) + BatchNorm folded into scale/shift.
            r = jnp.dot(xs.astype(jnp.bfloat16), ws_ref[...],
                        preferred_element_type=jnp.float32)
            r = r * scale_ref[...] + shift_ref[...]
        else:
            r = x_ref[0].reshape(L, C_in).astype(jnp.float32)  # identity (C_in==C_out)

        out_ref[...] = jnp.maximum(y2 + r, 0.0).reshape(
            1, H_out, W_out, C_out).astype(out_ref.dtype)

    return kernel


# ----------------------------------------------------------------------------
# Wrapper-side helpers.
# ----------------------------------------------------------------------------
def _phase_decompose_stride2(x_nhwc):
    """Pad by 1 and split into 2x2 phases (f32) so every stride-2 conv tap is a
    unit-stride slice in-kernel.  Used only for the single downsampling block."""
    N, H, W, C = x_nhwc.shape
    assert H % 2 == 0 and W % 2 == 0, "stride-2 block expects even spatial dims"
    H_out, W_out = H // 2, W // 2
    R, S = H_out + 1, W_out + 1                      # explicit phase extents
    xpad = jnp.pad(x_nhwc.astype(jnp.float32), ((0, 0), (1, 1), (1, 1), (0, 0)))
    subs = []
    for ph in range(2):
        for pw in range(2):
            s = xpad[:, ph::2, pw::2, :][:, :R, :S, :]
            pr, pc = R - s.shape[1], S - s.shape[2]
            if pr > 0 or pc > 0:
                s = jnp.pad(s, ((0, 0), (0, pr), (0, pc), (0, 0)))
            subs.append(s)
    x1 = jnp.stack(subs, axis=1)                     # (N, 4, R, S, C)
    return x1.reshape(N * 4, R, S, C), 4, R, S, H_out, W_out


def pallas_basic_block_nhwc(x_nhwc, params):
    stride = params["stride"]
    has_shortcut = params["has_shortcut"]
    N, H, W, C_in = x_nhwc.shape
    C_out = params["w1"].shape[0]
    assert stride in (1, 2), "only stride 1/2 supported (ResNetLayer semantics)"
    assert has_shortcut or (stride == 1 and C_in == C_out)

    # PyTorch OIHW -> (kh, kw, ci, co); matmul operands bf16, f32 accumulation.
    w1 = jnp.transpose(params["w1"], (2, 3, 1, 0)).astype(jnp.bfloat16)
    w2 = jnp.transpose(params["w2"], (2, 3, 1, 0)).astype(jnp.bfloat16)

    if stride == 1:
        H_out, W_out = H, W
        x_in = x_nhwc.astype(jnp.bfloat16)                       # bf16 in HBM
        x_spec = pl.BlockSpec((1, H, W, C_in), lambda n: (n, 0, 0, 0))
        x_block_bytes = H * W * C_in * 2
        scratch = [pltpu.VMEM((H + 2, W + 2, C_in), jnp.float32)]
    else:
        x_in, P, R, S, H_out, W_out = _phase_decompose_stride2(x_nhwc)
        x_spec = pl.BlockSpec((P, R, S, C_in), lambda n: (n, 0, 0, 0))
        x_block_bytes = P * R * S * C_in * 4
        scratch = []

    L = H_out * W_out
    scratch += [pltpu.VMEM((H_out + 2, W_out + 2, C_out), jnp.float32),
                pltpu.VMEM((L, C_out), jnp.float32)]

    inputs = [x_in, w1, w2]
    in_specs = [x_spec,
                pl.BlockSpec((3, 3, C_in, C_out), lambda n: (0, 0, 0, 0)),
                pl.BlockSpec((3, 3, C_out, C_out), lambda n: (0, 0, 0, 0))]

    if has_shortcut:
        # BatchNorm batch statistics couple all samples -> cannot live in the
        # per-sample grid.  Fold them into per-channel scale/shift in closed form
        # from sufficient statistics of x:  E[xW] = E[x] W,  Var(xW)_d = w_d^T Cov w_d
        # (no duplicated full-batch 1x1-conv pass; the value path is kernel-only).
        wsm = params["ws"].reshape(C_out, C_in).T.astype(jnp.float32)   # (C_in, C_out)
        xs = x_nhwc[:, ::stride, ::stride, :][:, :H_out, :W_out, :]
        xs = xs.reshape(-1, C_in).astype(jnp.float32)
        cnt = xs.shape[0]
        mean_x = jnp.mean(xs, axis=0)                                   # (C_in,)
        exxt = jnp.matmul(xs.T, xs, preferred_element_type=jnp.float32) / cnt
        cov = exxt - jnp.outer(mean_x, mean_x)                          # (C_in, C_in)
        mb = mean_x @ wsm                                               # (C_out,)
        vb = jnp.sum(wsm * (cov @ wsm), axis=0)                         # (C_out,)
        scale_v = params["gamma"] * jax.lax.rsqrt(vb + EPS)
        shift_v = params["beta"] - mb * scale_v
        inputs += [wsm.astype(jnp.bfloat16),
                   scale_v.reshape(1, C_out).astype(jnp.float32),
                   shift_v.reshape(1, C_out).astype(jnp.float32)]
        in_specs += [pl.BlockSpec((C_in, C_out), lambda n: (0, 0)),
                     pl.BlockSpec((1, C_out), lambda n: (0, 0)),
                     pl.BlockSpec((1, C_out), lambda n: (0, 0))]

    kernel = make_block_kernel(H=H, W=W, H_out=H_out, W_out=W_out,
                               C_in=C_in, C_out=C_out,
                               stride=stride, has_shortcut=has_shortcut)

    # Advisory cost estimate so XLA can overlap wrapper-side work with the call.
    flops = N * (2 * 9 * L * C_in * C_out + 2 * 9 * L * C_out * C_out)
    if has_shortcut:
        flops += N * 2 * L * C_in * C_out
    bytes_accessed = sum(int(a.size) * a.dtype.itemsize for a in inputs)
    bytes_accessed += N * L * C_out * 2
    cost = pl.CostEstimate(flops=int(flops),
                           transcendentals=int(2 * N * C_out),
                           bytes_accessed=int(bytes_accessed))

    # Per-step VMEM working set: double-buffered in/out blocks + weights + scratch.
    out_block_bytes = L * C_out * 2
    w_bytes = (9 * C_in * C_out + 9 * C_out * C_out
               + (C_in * C_out if has_shortcut else 0)) * 2
    scratch_bytes = ((H + 2) * (W + 2) * C_in * 4 if stride == 1 else 0)
    scratch_bytes += (H_out + 2) * (W_out + 2) * C_out * 4 + L * C_out * 4
    working = 2 * (x_block_bytes + out_block_bytes + w_bytes) + scratch_bytes
    # Default scoped VMEM is enough at small shapes; raise it at real CycleGAN
    # shapes.  Clamp to 48 MiB so the request also fits v7x's 64 MiB physical VMEM
    # (v5e/v6e can go higher; v7x wants row-tiling instead -- see TODO in header).
    vmem_limit = None
    if working > 12 * (1 << 20):
        vmem_limit = int(min(max(2 * working, 32 << 20), 48 << 20))

    out = pl.pallas_call(
        kernel,
        grid=(N,),
        in_specs=in_specs,
        out_specs=pl.BlockSpec((1, H_out, W_out, C_out), lambda n: (n, 0, 0, 0)),
        out_shape=jax.ShapeDtypeStruct((N, H_out, W_out, C_out), jnp.bfloat16),
        scratch_shapes=scratch,
        compiler_params=pltpu.CompilerParams(
            dimension_semantics=("parallel",),
            vmem_limit_bytes=vmem_limit),
        cost_estimate=cost,
    )(*inputs)
    return out


def pallas_resnet_layer(x_nchw, layer_params):
    # NHWC + bf16 activations end-to-end inside the layer; one transpose/cast
    # at layer entry and exit.
    x = jnp.transpose(x_nchw, (0, 2, 3, 1)).astype(jnp.bfloat16)
    for block_params in layer_params:
        x = pallas_basic_block_nhwc(x, block_params)
    return jnp.transpose(x, (0, 3, 1, 2)).astype(jnp.float32)


def init_resnet_layer_params(key, in_channels, out_channels, n=1):
    downsampling = 2 if in_channels != out_channels else 1
    blocks = []
    cin = in_channels
    for i in range(n):
        stride = downsampling if i == 0 else 1
        has_shortcut = cin != out_channels          # expansion = 1
        key, k1, k2, k3 = jax.random.split(key, 4)
        p = {
            "w1": (jax.random.normal(k1, (out_channels, cin, 3, 3), jnp.float32)
                   / math.sqrt(9 * cin)),
            "w2": (jax.random.normal(k2, (out_channels, out_channels, 3, 3), jnp.float32)
                   / math.sqrt(9 * out_channels)),
            "stride": stride,
            "has_shortcut": has_shortcut,
        }
        if has_shortcut:
            p["ws"] = (jax.random.normal(k3, (out_channels, cin, 1, 1), jnp.float32)
                       / math.sqrt(cin))
            p["gamma"] = jnp.ones((out_channels,), jnp.float32)
            p["beta"] = jnp.zeros((out_channels,), jnp.float32)
        blocks.append(p)
        cin = out_channels
    return blocks


# ----------------------------------------------------------------------------
# Pure-JAX reference (NCHW, f32, mirrors the PyTorch module) for verification.
# ----------------------------------------------------------------------------
def _ref_conv(x, w, stride, pad):
    return jax.lax.conv_general_dilated(
        x, w, (stride, stride), ((pad, pad), (pad, pad)),
        dimension_numbers=("NCHW", "OIHW", "NCHW"))


def _ref_instnorm(y):
    m = y.mean(axis=(2, 3), keepdims=True)
    v = ((y - m) ** 2).mean(axis=(2, 3), keepdims=True)
    return (y - m) / jnp.sqrt(v + EPS)


def ref_resnet_layer(x, layer_params):
    for p in layer_params:
        stride, has_shortcut = p["stride"], p["has_shortcut"]
        y = jax.nn.relu(_ref_instnorm(_ref_conv(x, p["w1"], stride, 1)))
        y = _ref_instnorm(_ref_conv(y, p["w2"], 1, 1))
        if has_shortcut:
            r = _ref_conv(x, p["ws"], stride, 0)
            m = r.mean(axis=(0, 2, 3), keepdims=True)
            v = ((r - m) ** 2).mean(axis=(0, 2, 3), keepdims=True)
            r = (r - m) / jnp.sqrt(v + EPS)
            r = r * p["gamma"].reshape(1, -1, 1, 1) + p["beta"].reshape(1, -1, 1, 1)
        else:
            r = x
        x = jax.nn.relu(y + r)
    return x


# ----------------------------------------------------------------------------
if __name__ == "__main__":
    key = jax.random.PRNGKey(0)
    kx, kp = jax.random.split(key)

    # ResNetLayer(4, 8, n=2): block0 downsamples (stride 2, 1x1+BN shortcut),
    # block1 is the stride-1 identity-residual block.
    N, C_IN, C_OUT, H, W = 2, 4, 16, 16, 16
    N, C_IN, C_OUT, H, W = 2, 4, 8, 16, 16
    x = jax.random.normal(kx, (N, C_IN, H, W), jnp.float32)

    layer_params = init_resnet_layer_params(kp, C_IN, C_OUT, n=2)

    out = jax.block_until_ready(pallas_resnet_layer(x, layer_params))
    assert out.shape == (N, C_OUT, H // 2, W // 2), out.shape

    ref = jax.block_until_ready(ref_resnet_layer(x, layer_params))
    max_err = float(jnp.max(jnp.abs(out - ref)))
    # Accuracy contract: bf16 conv operands + bf16 inter-block activations vs. f32
    # reference -> ~4e-2 absolute/relative agreement.
    assert jnp.allclose(out, ref, atol=4e-2, rtol=4e-2), max_err

    # TODO(synk): BatchNorm running-statistics update (training-time side effect) is
    # not modeled; only forward normalization with batch statistics is reproduced.
    print("KERNEL_OK")
</pallas_src>

<mosaic_0001>
module attributes {stable_mosaic.version = 11 : i64} {
  func.func @kernel(%arg0: i32, %arg1: memref<4x9x9x4xf32, #tpu.memory_space<vmem>>, %arg2: memref<3x3x4x8xbf16, #tpu.memory_space<vmem>>, %arg3: memref<3x3x8x8xbf16, #tpu.memory_space<vmem>>, %arg4: memref<4x8xbf16, #tpu.memory_space<vmem>>, %arg5: memref<1x8xf32, #tpu.memory_space<vmem>>, %arg6: memref<1x8xf32, #tpu.memory_space<vmem>>, %arg7: memref<1x8x8x8xbf16, #tpu.memory_space<vmem>>, %arg8: memref<10x10x8xf32, #tpu.memory_space<vmem>>, %arg9: memref<64x8xf32, #tpu.memory_space<vmem>>) attributes {dimension_semantics = [#tpu.dimension_semantics<parallel>], iteration_bounds = array<i64: 2>, scalar_prefetch = 0 : i64, scratch_operands = 2 : i64, tpu.core_type = #tpu.core_type<tc>, window_params = [{transform_indices = @transform_0, window_bounds = array<i64: 4, 9, 9, 4>}, {pipeline_mode = #tpu.pipeline_mode<synchronous>, transform_indices = @transform_1, window_bounds = array<i64: 3, 3, 4, 8>}, {pipeline_mode = #tpu.pipeline_mode<synchronous>, transform_indices = @transform_2, window_bounds = array<i64: 3, 3, 8, 8>}, {pipeline_mode = #tpu.pipeline_mode<synchronous>, transform_indices = @transform_3, window_bounds = array<i64: 4, 8>}, {pipeline_mode = #tpu.pipeline_mode<synchronous>, transform_indices = @transform_4, window_bounds = array<i64: 1, 8>}, {pipeline_mode = #tpu.pipeline_mode<synchronous>, transform_indices = @transform_5, window_bounds = array<i64: 1, 8>}, {transform_indices = @transform_6, window_bounds = array<i64: 1, 8, 8, 8>}]} {
    %c0 = arith.constant 0 : index
    %c0_0 = arith.constant 0 : index
    %c0_1 = arith.constant 0 : index
    %c0_2 = arith.constant 0 : index
    %0 = vector.load %arg1[%c0, %c0_0, %c0_1, %c0_2] : memref<4x9x9x4xf32, #tpu.memory_space<vmem>>, vector<1x8x8x4xf32>
    %1 = vector.shape_cast %0 : vector<1x8x8x4xf32> to vector<8x8x4xf32>
    %2 = vector.shape_cast %1 : vector<8x8x4xf32> to vector<64x4xf32>
    %3 = arith.truncf %2 : vector<64x4xf32> to vector<64x4xbf16>
    %c0_3 = arith.constant 0 : index
    %c0_4 = arith.constant 0 : index
    %c0_5 = arith.constant 0 : index
    %c0_6 = arith.constant 0 : index
    %4 = vector.load %arg2[%c0_3, %c0_4, %c0_5, %c0_6] : memref<3x3x4x8xbf16, #tpu.memory_space<vmem>>, vector<1x1x4x8xbf16>
    %5 = vector.shape_cast %4 : vector<1x1x4x8xbf16> to vector<4x8xbf16>
    %cst = arith.constant dense<0.000000e+00> : vector<64x8xf32>
    %6 = tpu.matmul %3, %5, %cst {dimension_numbers = #tpu.dot_dimension_numbers<[1], [0], [0], [1], [0, 0, 1, 1], [], []>} : vector<64x4xbf16>, vector<4x8xbf16>, vector<64x8xf32> -> vector<64x8xf32>
    %c0_7 = arith.constant 0 : index
    %c0_8 = arith.constant 0 : index
    %7 = vector.load %arg9[%c0_7, %c0_8] : memref<64x8xf32, #tpu.memory_space<vmem>>, vector<64x8xf32>
    tpu.vector_store %arg9[%c0_7, %c0_8], %6 {strides = array<i32>} : memref<64x8xf32, #tpu.memory_space<vmem>>, vector<64x8xf32>,
    %c1 = arith.constant 1 : index
    %c0_9 = arith.constant 0 : index
    %c0_10 = arith.constant 0 : index
    %c0_11 = arith.constant 0 : index
    %8 = vector.load %arg1[%c1, %c0_9, %c0_10, %c0_11] : memref<4x9x9x4xf32, #tpu.memory_space<vmem>>, vector<1x8x8x4xf32>
    %9 = vector.shape_cast %8 : vector<1x8x8x4xf32> to vector<8x8x4xf32>
    %10 = vector.shape_cast %9 : vector<8x8x4xf32> to vector<64x4xf32>
    %11 = arith.truncf %10 : vector<64x4xf32> to vector<64x4xbf16>
    %c0_12 = arith.constant 0 : index
    %c1_13 = arith.constant 1 : index
    %c0_14 = arith.constant 0 : index
    %c0_15 = arith.constant 0 : index
    %12 = vector.load %arg2[%c0_12, %c1_13, %c0_14, %c0_15] : memref<3x3x4x8xbf16, #tpu.memory_space<vmem>>, vector<1x1x4x8xbf16>
    %13 = vector.shape_cast %12 : vector<1x1x4x8xbf16> to vector<4x8xbf16>
    %cst_16 = arith.constant dense<0.000000e+00> : vector<64x8xf32>
    %14 = tpu.matmul %11, %13, %cst_16 {dimension_numbers = #tpu.dot_dimension_numbers<[1], [0], [0], [1], [0, 0, 1, 1], [], []>} : vector<64x4xbf16>, vector<4x8xbf16>, vector<64x8xf32> -> vector<64x8xf32>
    %c0_17 = arith.constant 0 : index
    %c0_18 = arith.constant 0 : index
    %15 = vector.load %arg9[%c0_17, %c0_18] : memref<64x8xf32, #tpu.memory_space<vmem>>, vector<64x8xf32>
    %16 = arith.addf %15, %14 : vector<64x8xf32>
    %c0_19 = arith.constant 0 : index
    %c0_20 = arith.constant 0 : index
    %17 = vector.load %arg9[%c0_19, %c0_20] : memref<64x8xf32, #tpu.memory_space<vmem>>, vector<64x8xf32>
    tpu.vector_store %arg9[%c0_19, %c0_20], %16 {strides = array<i32>} : memref<64x8xf32, #tpu.memory_space<vmem>>, vector<64x8xf32>,
    %c0_21 = arith.constant 0 : index
    %c0_22 = arith.constant 0 : index
    %c1_23 = arith.constant 1 : index
    %c0_24 = arith.constant 0 : index
    %18 = vector.load %arg1[%c0_21, %c0_22, %c1_23, %c0_24] : memref<4x9x9x4xf32, #tpu.memory_space<vmem>>, vector<1x8x8x4xf32>
    %19 = vector.shape_cast %18 : vector<1x8x8x4xf32> to vector<8x8x4xf32>
    %20 = vector.shape_cast %19 : vector<8x8x4xf32> to vector<64x4xf32>
    %21 = arith.truncf %20 : vector<64x4xf32> to vector<64x4xbf16>
    %c0_25 = arith.constant 0 : index
    %c2 = arith.constant 2 : index
    %c0_26 = arith.constant 0 : index
    %c0_27 = arith.constant 0 : index
    %22 = vector.load %arg2[%c0_25, %c2, %c0_26, %c0_27] : memref<3x3x4x8xbf16, #tpu.memory_space<vmem>>, vector<1x1x4x8xbf16>
    %23 = vector.shape_cast %22 : vector<1x1x4x8xbf16> to vector<4x8xbf16>
    %cst_28 = arith.constant dense<0.000000e+00> : vector<64x8xf32>
    %24 = tpu.matmul %21, %23, %cst_28 {dimension_numbers = #tpu.dot_dimension_numbers<[1], [0], [0], [1], [0, 0, 1, 1], [], []>} : vector<64x4xbf16>, vector<4x8xbf16>, vector<64x8xf32> -> vector<64x8xf32>
    %c0_29 = arith.constant 0 : index
    %c0_30 = arith.constant 0 : index
    %25 = vector.load %arg9[%c0_29, %c0_30] : memref<64x8xf32, #tpu.memory_space<vmem>>, vector<64x8xf32>
    %26 = arith.addf %25, %24 : vector<64x8xf32>
    %c0_31 = arith.constant 0 : index
    %c0_32 = arith.constant 0 : index
    %27 = vector.load %arg9[%c0_31, %c0_32] : memref<64x8xf32, #tpu.memory_space<vmem>>, vector<64x8xf32>
    tpu.vector_store %arg9[%c0_31, %c0_32], %26 {strides = array<i32>} : memref<64x8xf32, #tpu.memory_space<vmem>>, vector<64x8xf32>,
    %c2_33 = arith.constant 2 : index
    %c0_34 = arith.constant 0 : index
    %c0_35 = arith.constant 0 : index
    %c0_36 = arith.constant 0 : index
    %28 = vector.load %arg1[%c2_33, %c0_34, %c0_35, %c0_36] : memref<4x9x9x4xf32, #tpu.memory_space<vmem>>, vector<1x8x8x4xf32>
    %29 = vector.shape_cast %28 : vector<1x8x8x4xf32> to vector<8x8x4xf32>
    %30 = vector.shape_cast %29 : vector<8x8x4xf32> to vector<64x4xf32>
    %31 = arith.truncf %30 : vector<64x4xf32> to vector<64x4xbf16>
    %c1_37 = arith.constant 1 : index
    %c0_38 = arith.constant 0 : index
    %c0_39 = arith.constant 0 : index
    %c0_40 = arith.constant 0 : index
    %32 = vector.load %arg2[%c1_37, %c0_38, %c0_39, %c0_40] : memref<3x3x4x8xbf16, #tpu.memory_space<vmem>>, vector<1x1x4x8xbf16>
    %33 = vector.shape_cast %32 : vector<1x1x4x8xbf16> to vector<4x8xbf16>
    %cst_41 = arith.constant dense<0.000000e+00> : vector<64x8xf32>
    %34 = tpu.matmul %31, %33, %cst_41 {dimension_numbers = #tpu.dot_dimension_numbers<[1], [0], [0], [1], [0, 0, 1, 1], [], []>} : vector<64x4xbf16>, vector<4x8xbf16>, vector<64x8xf32> -> vector<64x8xf32>
    %c0_42 = arith.constant 0 : index
    %c0_43 = arith.constant 0 : index
    %35 = vector.load %arg9[%c0_42, %c0_43] : memref<64x8xf32, #tpu.memory_space<vmem>>, vector<64x8xf32>
    %36 = arith.addf %35, %34 : vector<64x8xf32>
    %c0_44 = arith.constant 0 : index
    %c0_45 = arith.constant 0 : index
    %37 = vector.load %arg9[%c0_44, %c0_45] : memref<64x8xf32, #tpu.memory_space<vmem>>, vector<64x8xf32>
    tpu.vector_store %arg9[%c0_44, %c0_45], %36 {strides = array<i32>} : memref<64x8xf32, #tpu.memory_space<vmem>>, vector<64x8xf32>,
    %c3 = arith.constant 3 : index
    %c0_46 = arith.constant 0 : index
    %c0_47 = arith.constant 0 : index
    %c0_48 = arith.constant 0 : index
    %38 = vector.load %arg1[%c3, %c0_46, %c0_47, %c0_48] : memref<4x9x9x4xf32, #tpu.memory_space<vmem>>, vector<1x8x8x4xf32>
    %39 = vector.shape_cast %38 : vector<1x8x8x4xf32> to vector<8x8x4xf32>
    %40 = vector.shape_cast %39 : vector<8x8x4xf32> to vector<64x4xf32>
    %41 = arith.truncf %40 : vector<64x4xf32> to vector<64x4xbf16>
    %c1_49 = arith.constant 1 : index
    %c1_50 = arith.constant 1 : index
    %c0_51 = arith.constant 0 : index
    %c0_52 = arith.constant 0 : index
    %42 = vector.load %arg2[%c1_49, %c1_50, %c0_51, %c0_52] : memref<3x3x4x8xbf16, #tpu.memory_space<vmem>>, vector<1x1x4x8xbf16>
    %43 = vector.shape_cast %42 : vector<1x1x4x8xbf16> to vector<4x8xbf16>
    %cst_53 = arith.constant dense<0.000000e+00> : vector<64x8xf32>
    %44 = tpu.matmul %41, %43, %cst_53 {dimension_numbers = #tpu.dot_dimension_numbers<[1], [0], [0], [1], [0, 0, 1, 1], [], []>} : vector<64x4xbf16>, vector<4x8xbf16>, vector<64x8xf32> -> vector<64x8xf32>
    %c0_54 = arith.constant 0 : index
    %c0_55 = arith.constant 0 : index
    %45 = vector.load %arg9[%c0_54, %c0_55] : memref<64x8xf32, #tpu.memory_space<vmem>>, vector<64x8xf32>
    %46 = arith.addf %45, %44 : vector<64x8xf32>
    %c0_56 = arith.constant 0 : index
    %c0_57 = arith.constant 0 : index
    %47 = vector.load %arg9[%c0_56, %c0_57] : memref<64x8xf32, #tpu.memory_space<vmem>>, vector<64x8xf32>
    tpu.vector_store %arg9[%c0_56, %c0_57], %46 {strides = array<i32>} : memref<64x8xf32, #tpu.memory_space<vmem>>, vector<64x8xf32>,
    %c2_58 = arith.constant 2 : index
    %c0_59 = arith.constant 0 : index
    %c1_60 = arith.constant 1 : index
    %c0_61 = arith.constant 0 : index
    %48 = vector.load %arg1[%c2_58, %c0_59, %c1_60, %c0_61] : memref<4x9x9x4xf32, #tpu.memory_space<vmem>>, vector<1x8x8x4xf32>
    %49 = vector.shape_cast %48 : vector<1x8x8x4xf32> to vector<8x8x4xf32>
    %50 = vector.shape_cast %49 : vector<8x8x4xf32> to vector<64x4xf32>
    %51 = arith.truncf %50 : vector<64x4xf32> to vector<64x4xbf16>
    %c1_62 = arith.constant 1 : index
    %c2_63 = arith.constant 2 : index
    %c0_64 = arith.constant 0 : index
    %c0_65 = arith.constant 0 : index
    %52 = vector.load %arg2[%c1_62, %c2_63, %c0_64, %c0_65] : memref<3x3x4x8xbf16, #tpu.memory_space<vmem>>, vector<1x1x4x8xbf16>
    %53 = vector.shape_cast %52 : vector<1x1x4x8xbf16> to vector<4x8xbf16>
    %cst_66 = arith.constant dense<0.000000e+00> : vector<64x8xf32>
    %54 = tpu.matmul %51, %53, %cst_66 {dimension_numbers = #tpu.dot_dimension_numbers<[1], [0], [0], [1], [0, 0, 1, 1], [], []>} : vector<64x4xbf16>, vector<4x8xbf16>, vector<64x8xf32> -> vector<64x8xf32>
    %c0_67 = arith.constant 0 : index
    %c0_68 = arith.constant 0 : index
    %55 = vector.load %arg9[%c0_67, %c0_68] : memref<64x8xf32, #tpu.memory_space<vmem>>, vector<64x8xf32>
    %56 = arith.addf %55, %54 : vector<64x8xf32>
    %c0_69 = arith.constant 0 : index
    %c0_70 = arith.constant 0 : index
    %57 = vector.load %arg9[%c0_69, %c0_70] : memref<64x8xf32, #tpu.memory_space<vmem>>, vector<64x8xf32>
    tpu.vector_store %arg9[%c0_69, %c0_70], %56 {strides = array<i32>} : memref<64x8xf32, #tpu.memory_space<vmem>>, vector<64x8xf32>,
    %c0_71 = arith.constant 0 : index
    %c1_72 = arith.constant 1 : index
    %c0_73 = arith.constant 0 : index
    %c0_74 = arith.constant 0 : index
    %58 = vector.load %arg1[%c0_71, %c1_72, %c0_73, %c0_74] : memref<4x9x9x4xf32, #tpu.memory_space<vmem>>, vector<1x8x8x4xf32>
    %59 = vector.shape_cast %58 : vector<1x8x8x4xf32> to vector<8x8x4xf32>
    %60 = vector.shape_cast %59 : vector<8x8x4xf32> to vector<64x4xf32>
    %61 = arith.truncf %60 : vector<64x4xf32> to vector<64x4xbf16>
    %c2_75 = arith.constant 2 : index
    %c0_76 = arith.constant 0 : index
    %c0_77 = arith.constant 0 : index
    %c0_78 = arith.constant 0 : index
    %62 = vector.load %arg2[%c2_75, %c0_76, %c0_77, %c0_78] : memref<3x3x4x8xbf16, #tpu.memory_space<vmem>>, vector<1x1x4x8xbf16>
    %63 = vector.shape_cast %62 : vector<1x1x4x8xbf16> to vector<4x8xbf16>
    %cst_79 = arith.constant dense<0.000000e+00> : vector<64x8xf32>
    %64 = tpu.matmul %61, %63, %cst_79 {dimension_numbers = #tpu.dot_dimension_numbers<[1], [0], [0], [1], [0, 0, 1, 1], [], []>} : vector<64x4xbf16>, vector<4x8xbf16>, vector<64x8xf32> -> vector<64x8xf32>
    %c0_80 = arith.constant 0 : index
    %c0_81 = arith.constant 0 : index
    %65 = vector.load %arg9[%c0_80, %c0_81] : memref<64x8xf32, #tpu.memory_space<vmem>>, vector<64x8xf32>
    %66 = arith.addf %65, %64 : vector<64x8xf32>
    %c0_82 = arith.constant 0 : index
    %c0_83 = arith.constant 0 : index
    %67 = vector.load %arg9[%c0_82, %c0_83] : memref<64x8xf32, #tpu.memory_space<vmem>>, vector<64x8xf32>
    tpu.vector_store %arg9[%c0_82, %c0_83], %66 {strides = array<i32>} : memref<64x8xf32, #tpu.memory_space<vmem>>, vector<64x8xf32>,
    %c1_84 = arith.constant 1 : index
    %c1_85 = arith.constant 1 : index
    %c0_86 = arith.constant 0 : index
    %c0_87 = arith.constant 0 : index
    %68 = vector.load %arg1[%c1_84, %c1_85, %c0_86, %c0_87] : memref<4x9x9x4xf32, #tpu.memory_space<vmem>>, vector<1x8x8x4xf32>
    %69 = vector.shape_cast %68 : vector<1x8x8x4xf32> to vector<8x8x4xf32>
    %70 = vector.shape_cast %69 : vector<8x8x4xf32> to vector<64x4xf32>
    %71 = arith.truncf %70 : vector<64x4xf32> to vector<64x4xbf16>
    %c2_88 = arith.constant 2 : index
    %c1_89 = arith.constant 1 : index
    %c0_90 = arith.constant 0 : index
    %c0_91 = arith.constant 0 : index
    %72 = vector.load %arg2[%c2_88, %c1_89, %c0_90, %c0_91] : memref<3x3x4x8xbf16, #tpu.memory_space<vmem>>, vector<1x1x4x8xbf16>
    %73 = vector.shape_cast %72 : vector<1x1x4x8xbf16> to vector<4x8xbf16>
    %cst_92 = arith.constant dense<0.000000e+00> : vector<64x8xf32>
    %74 = tpu.matmul %71, %73, %cst_92 {dimension_numbers = #tpu.dot_dimension_numbers<[1], [0], [0], [1], [0, 0, 1, 1], [], []>} : vector<64x4xbf16>, vector<4x8xbf16>, vector<64x8xf32> -> vector<64x8xf32>
    %c0_93 = arith.constant 0 : index
    %c0_94 = arith.constant 0 : index
    %75 = vector.load %arg9[%c0_93, %c0_94] : memref<64x8xf32, #tpu.memory_space<vmem>>, vector<64x8xf32>
    %76 = arith.addf %75, %74 : vector<64x8xf32>
    %c0_95 = arith.constant 0 : index
    %c0_96 = arith.constant 0 : index
    %77 = vector.load %arg9[%c0_95, %c0_96] : memref<64x8xf32, #tpu.memory_space<vmem>>, vector<64x8xf32>
    tpu.vector_store %arg9[%c0_95, %c0_96], %76 {strides = array<i32>} : memref<64x8xf32, #tpu.memory_space<vmem>>, vector<64x8xf32>,
    %c0_97 = arith.constant 0 : index
    %c1_98 = arith.constant 1 : index
    %c1_99 = arith.constant 1 : index
    %c0_100 = arith.constant 0 : index
    %78 = vector.load %arg1[%c0_97, %c1_98, %c1_99, %c0_100] : memref<4x9x9x4xf32, #tpu.memory_space<vmem>>, vector<1x8x8x4xf32>
    %79 = vector.shape_cast %78 : vector<1x8x8x4xf32> to vector<8x8x4xf32>
    %80 = vector.shape_cast %79 : vector<8x8x4xf32> to vector<64x4xf32>
    %81 = arith.truncf %80 : vector<64x4xf32> to vector<64x4xbf16>
    %c2_101 = arith.constant 2 : index
    %c2_102 = arith.constant 2 : index
    %c0_103 = arith.constant 0 : index
    %c0_104 = arith.constant 0 : index
    %82 = vector.load %arg2[%c2_101, %c2_102, %c0_103, %c0_104] : memref<3x3x4x8xbf16, #tpu.memory_space<vmem>>, vector<1x1x4x8xbf16>
    %83 = vector.shape_cast %82 : vector<1x1x4x8xbf16> to vector<4x8xbf16>
    %cst_105 = arith.constant dense<0.000000e+00> : vector<64x8xf32>
    %84 = tpu.matmul %81, %83, %cst_105 {dimension_numbers = #tpu.dot_dimension_numbers<[1], [0], [0], [1], [0, 0, 1, 1], [], []>} : vector<64x4xbf16>, vector<4x8xbf16>, vector<64x8xf32> -> vector<64x8xf32>
    %c0_106 = arith.constant 0 : index
    %c0_107 = arith.constant 0 : index
    %85 = vector.load %arg9[%c0_106, %c0_107] : memref<64x8xf32, #tpu.memory_space<vmem>>, vector<64x8xf32>
    %86 = arith.addf %85, %84 : vector<64x8xf32>
    %c0_108 = arith.constant 0 : index
    %c0_109 = arith.constant 0 : index
    %87 = vector.load %arg9[%c0_108, %c0_109] : memref<64x8xf32, #tpu.memory_space<vmem>>, vector<64x8xf32>
    tpu.vector_store %arg9[%c0_108, %c0_109], %86 {strides = array<i32>} : memref<64x8xf32, #tpu.memory_space<vmem>>, vector<64x8xf32>,
    %c0_110 = arith.constant 0 : index
    %c0_111 = arith.constant 0 : index
    %88 = vector.load %arg9[%c0_110, %c0_111] : memref<64x8xf32, #tpu.memory_space<vmem>>, vector<64x8xf32>
    %cst_112 = arith.constant dense<0.000000e+00> : vector<8xf32>
    %89 = vector.multi_reduction <add>, %88, %cst_112 [0] : vector<64x8xf32> to vector<8xf32>
    %90 = vector.shape_cast %89 : vector<8xf32> to vector<1x8xf32>
    %cst_113 = arith.constant 6.400000e+01 : f32
    %91 = vector.broadcast %cst_113 : f32 to vector<1x8xf32>
    %92 = arith.divf %90, %91 : vector<1x8xf32>
    %93 = arith.mulf %88, %88 : vector<64x8xf32>
    %cst_114 = arith.constant dense<0.000000e+00> : vector<8xf32>
    %94 = vector.multi_reduction <add>, %93, %cst_114 [0] : vector<64x8xf32> to vector<8xf32>
    %95 = vector.shape_cast %94 : vector<8xf32> to vector<1x8xf32>
    %cst_115 = arith.constant 6.400000e+01 : f32
    %96 = vector.broadcast %cst_115 : f32 to vector<1x8xf32>
    %97 = arith.divf %95, %96 : vector<1x8xf32>
    %98 = arith.mulf %92, %92 : vector<1x8xf32>
    %99 = arith.subf %97, %98 : vector<1x8xf32>
    %100 = vector.broadcast %92 : vector<1x8xf32> to vector<64x8xf32>
    %101 = arith.subf %88, %100 : vector<64x8xf32>
    %cst_116 = arith.constant 9.99999974E-6 : f32
    %102 = vector.broadcast %cst_116 : f32 to vector<1x8xf32>
    %103 = arith.addf %99, %102 : vector<1x8xf32>
    %104 = math.rsqrt %103 : vector<1x8xf32>
    %105 = vector.broadcast %104 : vector<1x8xf32> to vector<64x8xf32>
    %106 = arith.mulf %101, %105 : vector<64x8xf32>
    %cst_117 = arith.constant 0.000000e+00 : f32
    %107 = vector.broadcast %cst_117 : f32 to vector<64x8xf32>
    %108 = arith.maximumf %106, %107 : vector<64x8xf32>
    %cst_118 = arith.constant 0.000000e+00 : f32
    %109 = vector.broadcast %cst_118 : f32 to vector<1x10x8xf32>
    %cst_119 = arith.constant 0.000000e+00 : f32
    %110 = vector.broadcast %cst_119 : f32 to vector<10x1x8xf32>
    %c0_120 = arith.constant 0 : index
    %c0_121 = arith.constant 0 : index
    %c0_122 = arith.constant 0 : index
    %111 = vector.load %arg8[%c0_120, %c0_121, %c0_122] : memref<10x10x8xf32, #tpu.memory_space<vmem>>, vector<1x10x8xf32>
    tpu.vector_store %arg8[%c0_120, %c0_121, %c0_122], %109 {strides = array<i32>} : memref<10x10x8xf32, #tpu.memory_space<vmem>>, vector<1x10x8xf32>,
    %c9 = arith.constant 9 : index
    %c0_123 = arith.constant 0 : index
    %c0_124 = arith.constant 0 : index
    %112 = vector.load %arg8[%c9, %c0_123, %c0_124] : memref<10x10x8xf32, #tpu.memory_space<vmem>>, vector<1x10x8xf32>
    tpu.vector_store %arg8[%c9, %c0_123, %c0_124], %109 {strides = array<i32>} : memref<10x10x8xf32, #tpu.memory_space<vmem>>, vector<1x10x8xf32>,
    %c0_125 = arith.constant 0 : index
    %c0_126 = arith.constant 0 : index
    %c0_127 = arith.constant 0 : index
    %113 = vector.load %arg8[%c0_125, %c0_126, %c0_127] : memref<10x10x8xf32, #tpu.memory_space<vmem>>, vector<10x1x8xf32>
    tpu.vector_store %arg8[%c0_125, %c0_126, %c0_127], %110 {strides = array<i32>} : memref<10x10x8xf32, #tpu.memory_space<vmem>>, vector<10x1x8xf32>,
    %c0_128 = arith.constant 0 : index
    %c9_129 = arith.constant 9 : index
    %c0_130 = arith.constant 0 : index
    %114 = vector.load %arg8[%c0_128, %c9_129, %c0_130] : memref<10x10x8xf32, #tpu.memory_space<vmem>>, vector<10x1x8xf32>
    tpu.vector_store %arg8[%c0_128, %c9_129, %c0_130], %110 {strides = array<i32>} : memref<10x10x8xf32, #tpu.memory_space<vmem>>, vector<10x1x8xf32>,
    %115 = vector.shape_cast %108 : vector<64x8xf32> to vector<8x8x8xf32>
    %c1_131 = arith.constant 1 : index
    %c1_132 = arith.constant 1 : index
    %c0_133 = arith.constant 0 : index
    %116 = vector.load %arg8[%c1_131, %c1_132, %c0_133] : memref<10x10x8xf32, #tpu.memory_space<vmem>>, vector<8x8x8xf32>
    tpu.vector_store %arg8[%c1_131, %c1_132, %c0_133], %115 {strides = array<i32>} : memref<10x10x8xf32, #tpu.memory_space<vmem>>, vector<8x8x8xf32>,
    %c0_134 = arith.constant 0 : index
    %c0_135 = arith.constant 0 : index
    %c0_136 = arith.constant 0 : index
    %117 = vector.load %arg8[%c0_134, %c0_135, %c0_136] : memref<10x10x8xf32, #tpu.memory_space<vmem>>, vector<8x8x8xf32>
    %118 = vector.shape_cast %117 : vector<8x8x8xf32> to vector<64x8xf32>
    %119 = arith.truncf %118 : vector<64x8xf32> to vector<64x8xbf16>
    %c0_137 = arith.constant 0 : index
    %c0_138 = arith.constant 0 : index
    %c0_139 = arith.constant 0 : index
    %c0_140 = arith.constant 0 : index
    %120 = vector.load %arg3[%c0_137, %c0_138, %c0_139, %c0_140] : memref<3x3x8x8xbf16, #tpu.memory_space<vmem>>, vector<1x1x8x8xbf16>
    %121 = vector.shape_cast %120 : vector<1x1x8x8xbf16> to vector<8x8xbf16>
    %cst_141 = arith.constant dense<0.000000e+00> : vector<64x8xf32>
    %122 = tpu.matmul %119, %121, %cst_141 {dimension_numbers = #tpu.dot_dimension_numbers<[1], [0], [0], [1], [0, 0, 1, 1], [], []>} : vector<64x8xbf16>, vector<8x8xbf16>, vector<64x8xf32> -> vector<64x8xf32>
    %c0_142 = arith.constant 0 : index
    %c0_143 = arith.constant 0 : index
    %123 = vector.load %arg9[%c0_142, %c0_143] : memref<64x8xf32, #tpu.memory_space<vmem>>, vector<64x8xf32>
    tpu.vector_store %arg9[%c0_142, %c0_143], %122 {strides = array<i32>} : memref<64x8xf32, #tpu.memory_space<vmem>>, vector<64x8xf32>,
    %c0_144 = arith.constant 0 : index
    %c1_145 = arith.constant 1 : index
    %c0_146 = arith.constant 0 : index
    %124 = vector.load %arg8[%c0_144, %c1_145, %c0_146] : memref<10x10x8xf32, #tpu.memory_space<vmem>>, vector<8x8x8xf32>
    %125 = vector.shape_cast %124 : vector<8x8x8xf32> to vector<64x8xf32>
    %126 = arith.truncf %125 : vector<64x8xf32> to vector<64x8xbf16>
    %c0_147 = arith.constant 0 : index
    %c1_148 = arith.constant 1 : index
    %c0_149 = arith.constant 0 : index
    %c0_150 = arith.constant 0 : index
    %127 = vector.load %arg3[%c0_147, %c1_148, %c0_149, %c0_150] : memref<3x3x8x8xbf16, #tpu.memory_space<vmem>>, vector<1x1x8x8xbf16>
    %128 = vector.shape_cast %127 : vector<1x1x8x8xbf16> to vector<8x8xbf16>
    %cst_151 = arith.constant dense<0.000000e+00> : vector<64x8xf32>
    %129 = tpu.matmul %126, %128, %cst_151 {dimension_numbers = #tpu.dot_dimension_numbers<[1], [0], [0], [1], [0, 0, 1, 1], [], []>} : vector<64x8xbf16>, vector<8x8xbf16>, vector<64x8xf32> -> vector<64x8xf32>
    %c0_152 = arith.constant 0 : index
    %c0_153 = arith.constant 0 : index
    %130 = vector.load %arg9[%c0_152, %c0_153] : memref<64x8xf32, #tpu.memory_space<vmem>>, vector<64x8xf32>
    %131 = arith.addf %130, %129 : vector<64x8xf32>
    %c0_154 = arith.constant 0 : index
    %c0_155 = arith.constant 0 : index
    %132 = vector.load %arg9[%c0_154, %c0_155] : memref<64x8xf32, #tpu.memory_space<vmem>>, vector<64x8xf32>
    tpu.vector_store %arg9[%c0_154, %c0_155], %131 {strides = array<i32>} : memref<64x8xf32, #tpu.memory_space<vmem>>, vector<64x8xf32>,
    %c0_156 = arith.constant 0 : index
    %c2_157 = arith.constant 2 : index
    %c0_158 = arith.constant 0 : index
    %133 = vector.load %arg8[%c0_156, %c2_157, %c0_158] : memref<10x10x8xf32, #tpu.memory_space<vmem>>, vector<8x8x8xf32>
    %134 = vector.shape_cast %133 : vector<8x8x8xf32> to vector<64x8xf32>
    %135 = arith.truncf %134 : vector<64x8xf32> to vector<64x8xbf16>
    %c0_159 = arith.constant 0 : index
    %c2_160 = arith.constant 2 : index
    %c0_161 = arith.constant 0 : index
    %c0_162 = arith.constant 0 : index
    %136 = vector.load %arg3[%c0_159, %c2_160, %c0_161, %c0_162] : memref<3x3x8x8xbf16, #tpu.memory_space<vmem>>, vector<1x1x8x8xbf16>
    %137 = vector.shape_cast %136 : vector<1x1x8x8xbf16> to vector<8x8xbf16>
    %cst_163 = arith.constant dense<0.000000e+00> : vector<64x8xf32>
    %138 = tpu.matmul %135, %137, %cst_163 {dimension_numbers = #tpu.dot_dimension_numbers<[1], [0], [0], [1], [0, 0, 1, 1], [], []>} : vector<64x8xbf16>, vector<8x8xbf16>, vector<64x8xf32> -> vector<64x8xf32>
    %c0_164 = arith.constant 0 : index
    %c0_165 = arith.constant 0 : index
    %139 = vector.load %arg9[%c0_164, %c0_165] : memref<64x8xf32, #tpu.memory_space<vmem>>, vector<64x8xf32>
    %140 = arith.addf %139, %138 : vector<64x8xf32>
    %c0_166 = arith.constant 0 : index
    %c0_167 = arith.constant 0 : index
    %141 = vector.load %arg9[%c0_166, %c0_167] : memref<64x8xf32, #tpu.memory_space<vmem>>, vector<64x8xf32>
    tpu.vector_store %arg9[%c0_166, %c0_167], %140 {strides = array<i32>} : memref<64x8xf32, #tpu.memory_space<vmem>>, vector<64x8xf32>,
    %c1_168 = arith.constant 1 : index
    %c0_169 = arith.constant 0 : index
    %c0_170 = arith.constant 0 : index
    %142 = vector.load %arg8[%c1_168, %c0_169, %c0_170] : memref<10x10x8xf32, #tpu.memory_space<vmem>>, vector<8x8x8xf32>
    %143 = vector.shape_cast %142 : vector<8x8x8xf32> to vector<64x8xf32>
    %144 = arith.truncf %143 : vector<64x8xf32> to vector<64x8xbf16>
    %c1_171 = arith.constant 1 : index
    %c0_172 = arith.constant 0 : index
    %c0_173 = arith.constant 0 : index
    %c0_174 = arith.constant 0 : index
    %145 = vector.load %arg3[%c1_171, %c0_172, %c0_173, %c0_174] : memref<3x3x8x8xbf16, #tpu.memory_space<vmem>>, vector<1x1x8x8xbf16>
    %146 = vector.shape_cast %145 : vector<1x1x8x8xbf16> to vector<8x8xbf16>
    %cst_175 = arith.constant dense<0.000000e+00> : vector<64x8xf32>
    %147 = tpu.matmul %144, %146, %cst_175 {dimension_numbers = #tpu.dot_dimension_numbers<[1], [0], [0], [1], [0, 0, 1, 1], [], []>} : vector<64x8xbf16>, vector<8x8xbf16>, vector<64x8xf32> -> vector<64x8xf32>
    %c0_176 = arith.constant 0 : index
    %c0_177 = arith.constant 0 : index
    %148 = vector.load %arg9[%c0_176, %c0_177] : memref<64x8xf32, #tpu.memory_space<vmem>>, vector<64x8xf32>
    %149 = arith.addf %148, %147 : vector<64x8xf32>
    %c0_178 = arith.constant 0 : index
    %c0_179 = arith.constant 0 : index
    %150 = vector.load %arg9[%c0_178, %c0_179] : memref<64x8xf32, #tpu.memory_space<vmem>>, vector<64x8xf32>
    tpu.vector_store %arg9[%c0_178, %c0_179], %149 {strides = array<i32>} : memref<64x8xf32, #tpu.memory_space<vmem>>, vector<64x8xf32>,
    %c1_180 = arith.constant 1 : index
    %c1_181 = arith.constant 1 : index
    %c0_182 = arith.constant 0 : index
    %151 = vector.load %arg8[%c1_180, %c1_181, %c0_182] : memref<10x10x8xf32, #tpu.memory_space<vmem>>, vector<8x8x8xf32>
    %152 = vector.shape_cast %151 : vector<8x8x8xf32> to vector<64x8xf32>
    %153 = arith.truncf %152 : vector<64x8xf32> to vector<64x8xbf16>
    %c1_183 = arith.constant 1 : index
    %c1_184 = arith.constant 1 : index
    %c0_185 = arith.constant 0 : index
    %c0_186 = arith.constant 0 : index
    %154 = vector.load %arg3[%c1_183, %c1_184, %c0_185, %c0_186] : memref<3x3x8x8xbf16, #tpu.memory_space<vmem>>, vector<1x1x8x8xbf16>
    %155 = vector.shape_cast %154 : vector<1x1x8x8xbf16> to vector<8x8xbf16>
    %cst_187 = arith.constant dense<0.000000e+00> : vector<64x8xf32>
    %156 = tpu.matmul %153, %155, %cst_187 {dimension_numbers = #tpu.dot_dimension_numbers<[1], [0], [0], [1], [0, 0, 1, 1], [], []>} : vector<64x8xbf16>, vector<8x8xbf16>, vector<64x8xf32> -> vector<64x8xf32>
    %c0_188 = arith.constant 0 : index
    %c0_189 = arith.constant 0 : index
    %157 = vector.load %arg9[%c0_188, %c0_189] : memref<64x8xf32, #tpu.memory_space<vmem>>, vector<64x8xf32>
    %158 = arith.addf %157, %156 : vector<64x8xf32>
    %c0_190 = arith.constant 0 : index
    %c0_191 = arith.constant 0 : index
    %159 = vector.load %arg9[%c0_190, %c0_191] : memref<64x8xf32, #tpu.memory_space<vmem>>, vector<64x8xf32>
    tpu.vector_store %arg9[%c0_190, %c0_191], %158 {strides = array<i32>} : memref<64x8xf32, #tpu.memory_space<vmem>>, vector<64x8xf32>,
    %c1_192 = arith.constant 1 : index
    %c2_193 = arith.constant 2 : index
    %c0_194 = arith.constant 0 : index
    %160 = vector.load %arg8[%c1_192, %c2_193, %c0_194] : memref<10x10x8xf32, #tpu.memory_space<vmem>>, vector<8x8x8xf32>
    %161 = vector.shape_cast %160 : vector<8x8x8xf32> to vector<64x8xf32>
    %162 = arith.truncf %161 : vector<64x8xf32> to vector<64x8xbf16>
    %c1_195 = arith.constant 1 : index
    %c2_196 = arith.constant 2 : index
    %c0_197 = arith.constant 0 : index
    %c0_198 = arith.constant 0 : index
    %163 = vector.load %arg3[%c1_195, %c2_196, %c0_197, %c0_198] : memref<3x3x8x8xbf16, #tpu.memory_space<vmem>>, vector<1x1x8x8xbf16>
    %164 = vector.shape_cast %163 : vector<1x1x8x8xbf16> to vector<8x8xbf16>
    %cst_199 = arith.constant dense<0.000000e+00> : vector<64x8xf32>
    %165 = tpu.matmul %162, %164, %cst_199 {dimension_numbers = #tpu.dot_dimension_numbers<[1], [0], [0], [1], [0, 0, 1, 1], [], []>} : vector<64x8xbf16>, vector<8x8xbf16>, vector<64x8xf32> -> vector<64x8xf32>
    %c0_200 = arith.constant 0 : index
    %c0_201 = arith.constant 0 : index
    %166 = vector.load %arg9[%c0_200, %c0_201] : memref<64x8xf32, #tpu.memory_space<vmem>>, vector<64x8xf32>
    %167 = arith.addf %166, %165 : vector<64x8xf32>
    %c0_202 = arith.constant 0 : index
    %c0_203 = arith.constant 0 : index
    %168 = vector.load %arg9[%c0_202, %c0_203] : memref<64x8xf32, #tpu.memory_space<vmem>>, vector<64x8xf32>
    tpu.vector_store %arg9[%c0_202, %c0_203], %167 {strides = array<i32>} : memref<64x8xf32, #tpu.memory_space<vmem>>, vector<64x8xf32>,
    %c2_204 = arith.constant 2 : index
    %c0_205 = arith.constant 0 : index
    %c0_206 = arith.constant 0 : index
    %169 = vector.load %arg8[%c2_204, %c0_205, %c0_206] : memref<10x10x8xf32, #tpu.memory_space<vmem>>, vector<8x8x8xf32>
    %170 = vector.shape_cast %169 : vector<8x8x8xf32> to vector<64x8xf32>
    %171 = arith.truncf %170 : vector<64x8xf32> to vector<64x8xbf16>
    %c2_207 = arith.constant 2 : index
    %c0_208 = arith.constant 0 : index
    %c0_209 = arith.constant 0 : index
    %c0_210 = arith.constant 0 : index
    %172 = vector.load %arg3[%c2_207, %c0_208, %c0_209, %c0_210] : memref<3x3x8x8xbf16, #tpu.memory_space<vmem>>, vector<1x1x8x8xbf16>
    %173 = vector.shape_cast %172 : vector<1x1x8x8xbf16> to vector<8x8xbf16>
    %cst_211 = arith.constant dense<0.000000e+00> : vector<64x8xf32>
    %174 = tpu.matmul %171, %173, %cst_211 {dimension_numbers = #tpu.dot_dimension_numbers<[1], [0], [0], [1], [0, 0, 1, 1], [], []>} : vector<64x8xbf16>, vector<8x8xbf16>, vector<64x8xf32> -> vector<64x8xf32>
    %c0_212 = arith.constant 0 : index
    %c0_213 = arith.constant 0 : index
    %175 = vector.load %arg9[%c0_212, %c0_213] : memref<64x8xf32, #tpu.memory_space<vmem>>, vector<64x8xf32>
    %176 = arith.addf %175, %174 : vector<64x8xf32>
    %c0_214 = arith.constant 0 : index
    %c0_215 = arith.constant 0 : index
    %177 = vector.load %arg9[%c0_214, %c0_215] : memref<64x8xf32, #tpu.memory_space<vmem>>, vector<64x8xf32>
    tpu.vector_store %arg9[%c0_214, %c0_215], %176 {strides = array<i32>} : memref<64x8xf32, #tpu.memory_space<vmem>>, vector<64x8xf32>,
    %c2_216 = arith.constant 2 : index
    %c1_217 = arith.constant 1 : index
    %c0_218 = arith.constant 0 : index
    %178 = vector.load %arg8[%c2_216, %c1_217, %c0_218] : memref<10x10x8xf32, #tpu.memory_space<vmem>>, vector<8x8x8xf32>
    %179 = vector.shape_cast %178 : vector<8x8x8xf32> to vector<64x8xf32>
    %180 = arith.truncf %179 : vector<64x8xf32> to vector<64x8xbf16>
    %c2_219 = arith.constant 2 : index
    %c1_220 = arith.constant 1 : index
    %c0_221 = arith.constant 0 : index
    %c0_222 = arith.constant 0 : index
    %181 = vector.load %arg3[%c2_219, %c1_220, %c0_221, %c0_222] : memref<3x3x8x8xbf16, #tpu.memory_space<vmem>>, vector<1x1x8x8xbf16>
    %182 = vector.shape_cast %181 : vector<1x1x8x8xbf16> to vector<8x8xbf16>
    %cst_223 = arith.constant dense<0.000000e+00> : vector<64x8xf32>
    %183 = tpu.matmul %180, %182, %cst_223 {dimension_numbers = #tpu.dot_dimension_numbers<[1], [0], [0], [1], [0, 0, 1, 1], [], []>} : vector<64x8xbf16>, vector<8x8xbf16>, vector<64x8xf32> -> vector<64x8xf32>
    %c0_224 = arith.constant 0 : index
    %c0_225 = arith.constant 0 : index
    %184 = vector.load %arg9[%c0_224, %c0_225] : memref<64x8xf32, #tpu.memory_space<vmem>>, vector<64x8xf32>
    %185 = arith.addf %184, %183 : vector<64x8xf32>
    %c0_226 = arith.constant 0 : index
    %c0_227 = arith.constant 0 : index
    %186 = vector.load %arg9[%c0_226, %c0_227] : memref<64x8xf32, #tpu.memory_space<vmem>>, vector<64x8xf32>
    tpu.vector_store %arg9[%c0_226, %c0_227], %185 {strides = array<i32>} : memref<64x8xf32, #tpu.memory_space<vmem>>, vector<64x8xf32>,
    %c2_228 = arith.constant 2 : index
    %c2_229 = arith.constant 2 : index
    %c0_230 = arith.constant 0 : index
    %187 = vector.load %arg8[%c2_228, %c2_229, %c0_230] : memref<10x10x8xf32, #tpu.memory_space<vmem>>, vector<8x8x8xf32>
    %188 = vector.shape_cast %187 : vector<8x8x8xf32> to vector<64x8xf32>
    %189 = arith.truncf %188 : vector<64x8xf32> to vector<64x8xbf16>
    %c2_231 = arith.constant 2 : index
    %c2_232 = arith.constant 2 : index
    %c0_233 = arith.constant 0 : index
    %c0_234 = arith.constant 0 : index
    %190 = vector.load %arg3[%c2_231, %c2_232, %c0_233, %c0_234] : memref<3x3x8x8xbf16, #tpu.memory_space<vmem>>, vector<1x1x8x8xbf16>
    %191 = vector.shape_cast %190 : vector<1x1x8x8xbf16> to vector<8x8xbf16>
    %cst_235 = arith.constant dense<0.000000e+00> : vector<64x8xf32>
    %192 = tpu.matmul %189, %191, %cst_235 {dimension_numbers = #tpu.dot_dimension_numbers<[1], [0], [0], [1], [0, 0, 1, 1], [], []>} : vector<64x8xbf16>, vector<8x8xbf16>, vector<64x8xf32> -> vector<64x8xf32>
    %c0_236 = arith.constant 0 : index
    %c0_237 = arith.constant 0 : index
    %193 = vector.load %arg9[%c0_236, %c0_237] : memref<64x8xf32, #tpu.memory_space<vmem>>, vector<64x8xf32>
    %194 = arith.addf %193, %192 : vector<64x8xf32>
    %c0_238 = arith.constant 0 : index
    %c0_239 = arith.constant 0 : index
    %195 = vector.load %arg9[%c0_238, %c0_239] : memref<64x8xf32, #tpu.memory_space<vmem>>, vector<64x8xf32>
    tpu.vector_store %arg9[%c0_238, %c0_239], %194 {strides = array<i32>} : memref<64x8xf32, #tpu.memory_space<vmem>>, vector<64x8xf32>,
    %c0_240 = arith.constant 0 : index
    %c0_241 = arith.constant 0 : index
    %196 = vector.load %arg9[%c0_240, %c0_241] : memref<64x8xf32, #tpu.memory_space<vmem>>, vector<64x8xf32>
    %cst_242 = arith.constant dense<0.000000e+00> : vector<8xf32>
    %197 = vector.multi_reduction <add>, %196, %cst_242 [0] : vector<64x8xf32> to vector<8xf32>
    %198 = vector.shape_cast %197 : vector<8xf32> to vector<1x8xf32>
    %cst_243 = arith.constant 6.400000e+01 : f32
    %199 = vector.broadcast %cst_243 : f32 to vector<1x8xf32>
    %200 = arith.divf %198, %199 : vector<1x8xf32>
    %201 = arith.mulf %196, %196 : vector<64x8xf32>
    %cst_244 = arith.constant dense<0.000000e+00> : vector<8xf32>
    %202 = vector.multi_reduction <add>, %201, %cst_244 [0] : vector<64x8xf32> to vector<8xf32>
    %203 = vector.shape_cast %202 : vector<8xf32> to vector<1x8xf32>
    %cst_245 = arith.constant 6.400000e+01 : f32
    %204 = vector.broadcast %cst_245 : f32 to vector<1x8xf32>
    %205 = arith.divf %203, %204 : vector<1x8xf32>
    %206 = arith.mulf %200, %200 : vector<1x8xf32>
    %207 = arith.subf %205, %206 : vector<1x8xf32>
    %208 = vector.broadcast %200 : vector<1x8xf32> to vector<64x8xf32>
    %209 = arith.subf %196, %208 : vector<64x8xf32>
    %cst_246 = arith.constant 9.99999974E-6 : f32
    %210 = vector.broadcast %cst_246 : f32 to vector<1x8xf32>
    %211 = arith.addf %207, %210 : vector<1x8xf32>
    %212 = math.rsqrt %211 : vector<1x8xf32>
    %213 = vector.broadcast %212 : vector<1x8xf32> to vector<64x8xf32>
    %214 = arith.mulf %209, %213 : vector<64x8xf32>
    %c3_247 = arith.constant 3 : index
    %c0_248 = arith.constant 0 : index
    %c0_249 = arith.constant 0 : index
    %c0_250 = arith.constant 0 : index
    %215 = vector.load %arg1[%c3_247, %c0_248, %c0_249, %c0_250] : memref<4x9x9x4xf32, #tpu.memory_space<vmem>>, vector<1x8x8x4xf32>
    %216 = vector.shape_cast %215 : vector<1x8x8x4xf32> to vector<8x8x4xf32>
    %217 = vector.shape_cast %216 : vector<8x8x4xf32> to vector<64x4xf32>
    %218 = arith.truncf %217 : vector<64x4xf32> to vector<64x4xbf16>
    %c0_251 = arith.constant 0 : index
    %c0_252 = arith.constant 0 : index
    %219 = vector.load %arg4[%c0_251, %c0_252] : memref<4x8xbf16, #tpu.memory_space<vmem>>, vector<4x8xbf16>
    %cst_253 = arith.constant dense<0.000000e+00> : vector<64x8xf32>
    %220 = tpu.matmul %218, %219, %cst_253 {dimension_numbers = #tpu.dot_dimension_numbers<[1], [0], [0], [1], [0, 0, 1, 1], [], []>} : vector<64x4xbf16>, vector<4x8xbf16>, vector<64x8xf32> -> vector<64x8xf32>
    %c0_254 = arith.constant 0 : index
    %c0_255 = arith.constant 0 : index
    %221 = vector.load %arg5[%c0_254, %c0_255] : memref<1x8xf32, #tpu.memory_space<vmem>>, vector<1x8xf32>
    %222 = vector.broadcast %221 : vector<1x8xf32> to vector<64x8xf32>
    %223 = arith.mulf %220, %222 : vector<64x8xf32>
    %c0_256 = arith.constant 0 : index
    %c0_257 = arith.constant 0 : index
    %224 = vector.load %arg6[%c0_256, %c0_257] : memref<1x8xf32, #tpu.memory_space<vmem>>, vector<1x8xf32>
    %225 = vector.broadcast %224 : vector<1x8xf32> to vector<64x8xf32>
    %226 = arith.addf %223, %225 : vector<64x8xf32>
    %227 = arith.addf %214, %226 : vector<64x8xf32>
    %cst_258 = arith.constant 0.000000e+00 : f32
    %228 = vector.broadcast %cst_258 : f32 to vector<64x8xf32>
    %229 = arith.maximumf %227, %228 : vector<64x8xf32>
    %230 = vector.shape_cast %229 : vector<64x8xf32> to vector<1x8x8x8xf32>
    %231 = arith.truncf %230 : vector<1x8x8x8xf32> to vector<1x8x8x8xbf16>
    %c0_259 = arith.constant 0 : index
    %c0_260 = arith.constant 0 : index
    %c0_261 = arith.constant 0 : index
    %c0_262 = arith.constant 0 : index
    %232 = vector.load %arg7[%c0_259, %c0_260, %c0_261, %c0_262] : memref<1x8x8x8xbf16, #tpu.memory_space<vmem>>, vector<1x8x8x8xbf16>
    tpu.vector_store %arg7[%c0_259, %c0_260, %c0_261, %c0_262], %231 {strides = array<i32>} : memref<1x8x8x8xbf16, #tpu.memory_space<vmem>>, vector<1x8x8x8xbf16>,
    return
  }
  func.func @transform_0(%arg0: i32) -> (i32, i32, i32, i32) {
    %c0_i32 = arith.constant 0 : i32
    %c0_i32_0 = arith.constant 0 : i32
    %c0_i32_1 = arith.constant 0 : i32
    %c0_i32_2 = arith.constant 0 : i32
    return %arg0, %c0_i32, %c0_i32_0, %c0_i32_1 : i32, i32, i32, i32
  }
  func.func @transform_1(%arg0: i32) -> (i32, i32, i32, i32) {
    %c0_i32 = arith.constant 0 : i32
    %c0_i32_0 = arith.constant 0 : i32
    %c0_i32_1 = arith.constant 0 : i32
    %c0_i32_2 = arith.constant 0 : i32
    %c0_i32_3 = arith.constant 0 : i32
    return %c0_i32, %c0_i32_0, %c0_i32_1, %c0_i32_2 : i32, i32, i32, i32
  }
  func.func @transform_2(%arg0: i32) -> (i32, i32, i32, i32) {
    %c0_i32 = arith.constant 0 : i32
    %c0_i32_0 = arith.constant 0 : i32
    %c0_i32_1 = arith.constant 0 : i32
    %c0_i32_2 = arith.constant 0 : i32
    %c0_i32_3 = arith.constant 0 : i32
    return %c0_i32, %c0_i32_0, %c0_i32_1, %c0_i32_2 : i32, i32, i32, i32
  }
  func.func @transform_3(%arg0: i32) -> (i32, i32) {
    %c0_i32 = arith.constant 0 : i32
    %c0_i32_0 = arith.constant 0 : i32
    %c0_i32_1 = arith.constant 0 : i32
    return %c0_i32, %c0_i32_0 : i32, i32
  }
  func.func @transform_4(%arg0: i32) -> (i32, i32) {
    %c0_i32 = arith.constant 0 : i32
    %c0_i32_0 = arith.constant 0 : i32
    %c0_i32_1 = arith.constant 0 : i32
    return %c0_i32, %c0_i32_0 : i32, i32
  }
  func.func @transform_5(%arg0: i32) -> (i32, i32) {
    %c0_i32 = arith.constant 0 : i32
    %c0_i32_0 = arith.constant 0 : i32
    %c0_i32_1 = arith.constant 0 : i32
    return %c0_i32, %c0_i32_0 : i32, i32
  }
  func.func @transform_6(%arg0: i32) -> (i32, i32, i32, i32) {
    %c0_i32 = arith.constant 0 : i32
    %c0_i32_0 = arith.constant 0 : i32
    %c0_i32_1 = arith.constant 0 : i32
    %c0_i32_2 = arith.constant 0 : i32
    return %arg0, %c0_i32, %c0_i32_0, %c0_i32_1 : i32, i32, i32, i32
  }
}

</mosaic_0001>

<bundles_post_ra>
// kernel: tpu_custom_call.1
= control target key start
LH: loop header
LB: loop body
LE: loop exit
PB: predicated region body
PF: predicated region fallthrough
CT: control target
= control target key end

     0   :  { %11 = vsyncpa [#allocation5], 0  ;;  %s4296_s0 = inlined_call_operand.vmem [shape: f32[8,9,9,4], index: 0, kind: input, shape index: {}]   ;;  %s4297_s1 = inlined_call_operand.vmem [shape: bf16[3,3,4,8], index: 1, kind: input, shape index: {}]   ;;  %s4298_s2 = inlined_call_operand.vmem [shape: bf16[3,3,8,8], index: 2, kind: input, shape index: {}]   ;;  %s4299_s3 = inlined_call_operand.vmem [shape: bf16[4,8], index: 3, kind: input, shape index: {}]   ;;  %s4300_s4 = inlined_call_operand.vmem [shape: f32[1,8], index: 4, kind: input, shape index: {}]   ;;  %s4301_s5 = inlined_call_operand.vmem [shape: f32[1,8], index: 5, kind: input, shape index: {}]   ;;  %s4302_s6 = inlined_call_operand.hbm [shape: bf16[2,8,8,8], index: 6, kind: output, shape index: {}]  }
   0x1   :  { %13 = vsyncpa [#allocation5 + $0x1], 0  ;;  %s3421_s21 = smov 0   ;;  %s3423_s22 = smov 0  }
   0x2   :  { %s3425_s23 = smov 0   ;;  %s3427_s24 = smov 0  }
   0x3 LB: > { %s3442_s25 = sadd.s32 4294967295, %s3380_s24   ;;  %s2793_s26 = sadd.s32 4294967294, %s3380_s24   ;;  %s3380_s24 = sphi %s3427_s24, %s4308_s24   ;;  %s3376_s23 = sphi %s3425_s23, %s4307_s23   ;;  %s3372_s22 = sphi %s3423_s22, %s4306_s22   ;;  %s3368_s21 = sphi %s3421_s21, %s4305_s21  }
   0x4   : > { %s3446_s27 = sadd.s32 1, %s3380_s24   ;;  %s157_s28 = sadd.s32 1, %s3376_s23 }
   0x5   : > { %s154_s29 = ssub.s32 %s3380_s24, %s3446_s27  ;;  %p167_p0 = scmp.ne.s32.totalorder %s3376_s23, %s3372_s22 }
   0x6   : > { %p155_p1 = scmp.eq.s32.totalorder %s154_s29, 0  ;;  %p168_p2 = scmp.eq.s32.totalorder %s3442_s25, 1 }
   0x7   : > { %p173_p3 = scmp.ne.s32.totalorder %s3372_s22, %s3368_s21  ;;  %p174_p4 = scmp.eq.s32.totalorder %s2793_s26, 1 }
   0x8   : > { %s3457_s30 = scalar_select %p155_p1, %s3376_s23, %s157_s28  }
   0x9   : > { %p3459_p5 = por %p168_p2, %p167_p0  ;;  %p3463_p6 = por %p174_p4, %p173_p3 }
   0xa   : > { %p2796_p7 = scmp.ge.s32.totalorder %s3380_s24, 1  ;;  %p217_p8 = scmp.lt.s32.totalorder %s3380_s24, 3 }
   0xc   : > { %p218_p9 = pnand %p2796_p7, %p217_p8 }
   0xd   : > { %v268_v0 = vld [vmem:[%s4297_s1] sm:$0x3] (!%p218_p9)  ;;  %vm282_vm0 = vcmask (!%p218_p9), 1041408   ;;  %s2798_s11 = sshll.u32 (!%p218_p9), %s3442_s25, 2  ;;  %v2812_v2 = vld [vmem:[%s4297_s1 + $0x2] sm:$0x3] (!%p218_p9) }
   0xe   : > { %221 = sbr.rel (%p218_p9) target bundleno = 771 (0x303), region = 44  ;;  %3252 = vmatprep.subr.msk.bf16.mxu1 (!%p218_p9), %vm282_vm0, %v268_v0  ;;  %3251 = vmatprep.subr.msk.bf16.mxu0 (!%p218_p9), %vm282_vm0, %v268_v0  ;;  %v284_v1 = vsel (!%p218_p9), %vm282_vm0, %v268_v0, 0  ;;  %p249_p10 = scmp.lt.s32.totalorder (!%p218_p9), %s2798_s11, 7  ;;  %v2817_v3 = vld [vmem:[%s4297_s1 + $0x4] sm:$0x3] (!%p218_p9)  ;;  %vm269_vm1 = vcmask (!%p218_p9), 31744  }
   0xf   : > { %3250 = vmatpush3.bf16.msra.mxu1 (!%p218_p9), %v284_v1  ;;  %3060 = vmatpush3.bf16.msra.mxu0 (!%p218_p9), %v284_v1  ;;  %v506_v16 = vsel (!%p218_p9), %vm282_vm0, %v2817_v3, 0  ;;  %v388_v18 = vsel (!%p218_p9), %vm282_vm0, %v2812_v2, 0  ;;  %v2830_v21 = vld [vmem:[%s4297_s1 + $0x6] sm:$0x3] (!%p218_p9)  ;;  %v2843_v27 = vld [vmem:[%s4297_s1 + $0x8] sm:$0x3] (!%p218_p9) }
  0x10   : > { %3253 = vmatprep.subr.msk.bf16.mxu1 (!%p218_p9), %vm282_vm0, %v2812_v2  ;;  %3254 = vmatprep.subr.msk.bf16.mxu0 (!%p218_p9), %vm282_vm0, %v2817_v3  ;;  %v625_v38 = vsel (!%p218_p9), %vm282_vm0, %v2830_v21, 0  ;;  %v744_v39 = vsel (!%p218_p9), %vm282_vm0, %v2843_v27, 0  ;;  %v2856_v40 = vld [vmem:[%s4297_s1 + $0xa] sm:$0x3] (!%p218_p9)  ;;  %v2869_v41 = vld [vmem:[%s4297_s1 + $0xc] sm:$0x3] (!%p218_p9) }
  0x11   : > { %v862_v2 = vsel (!%p218_p9), %vm282_vm0, %v2856_v40, 0  ;;  %v981_v3 = vsel (!%p218_p9), %vm282_vm0, %v2869_v41, 0  ;;  %vm351_vm2 = vcmask (!%p218_p9), 64512   ;;  %vm1459_vm3 = vcmask (!%p218_p9), 1043456   ;;  %s245_s12 = sand.u32 (!%p218_p9), 1, %s3372_s22   ;;  %s2963_s14 = sshll.u32 (!%p218_p9), %s3442_s25, 9 }
  0x12   : > { %vm1404_vm4 = vcmask (!%p218_p9), 57344   ;;  %vm1399_vm5 = vcmask (!%p218_p9), 58368   ;;  %s4226_s13 = sshll.u32 (!%p218_p9), %s245_s12, 5  ;;  %vm2708_vm6 = vcmask (!%p218_p9), 60416   ;;  %s4241_s20 = scalar_lea.hbm (!%p218_p9), %s4302_s6, %s2963_s14 }
  0x13   : > { %s247_s15 = scalar_lea.vmem (!%p218_p9), [#allocation4], %s4226_s13  ;;  %s4255_s25 = scalar_lea.sflag (!%p218_p9), [#allocation5], %s245_s12 }
  0x14   : > { %s3383_s28 = smov (!%p218_p9), [#allocation4]  }
  0x15   : > { %s4310_s11 = smov (!%p249_p10, %s2798_s11), 7  ;;  %s3322_s29 = sshll.u32 %s3383_s28, 4  ;;  %s3323_s29 = int_to_ptr.vmem [resolvable:$false] %s3322_s29 }
  0x16   : > { %s3271_s16 = smul.u32 144, %s4310_s11 }
  0x18   : > { %s3487_s19 = scalar_lea.vmem %s4296_s0, %s3271_s16  ;;  %s2731_s16 = sshll.u32 %s247_s15, 4  ;;  %s4243_s16 = int_to_ptr.vmem [resolvable:$true] %s2731_s16 }
  0x19   : > { %v256_v4 = vld [vmem:[%s3487_s19] sm:$0xff]  ;;  %v3491_v5 = vld [vmem:[%s3487_s19 + $0x10] sm:$0xff]  ;;  %s3318_s26 = scalar_lea.vmem %s4243_s16, 512  ;;  %p3325_p0 = scmp.lt.s32.totalorder %s4243_s16, %s3323_s29 }
  0x1a   : > { %v3494_v6 = vld [vmem:[%s3487_s19 + $0x40] sm:$0xff]  ;;  %v264_v7 = vpack.c.bf16 %v3491_v5, %v256_v4  ;;  %v3498_v8 = vld [vmem:[%s3487_s19 + $0x50] sm:$0xff]  ;;  %v2882_v4 = vld [vmem:[%s4297_s1 + $0xe] sm:$0x3]  ;;  %p3319_p11 = scmp.ne.s32.totalorder %s4243_s16, %s3318_s26 }
  0x1b   : > { %v3501_v9 = vld [vmem:[%s3487_s19 + $0x20] sm:$0xff]  ;;  %v3504_v10 = vld [vmem:[%s3487_s19 + $0x30] sm:$0xff]  ;;  %v266_v11 = vpack.c.bf16 %v3498_v8, %v3494_v6 }
  0x1c   : > { %v265_v12 = vpack.c.bf16 %v3504_v10, %v3501_v9  ;;  %v3511_v13 = vld [vmem:[%s3487_s19 + $0x60] sm:$0xff]  ;;  %v3514_v14 = vld [vmem:[%s3487_s19 + $0x70] sm:$0xff]  ;;  %3061 = vmatprep.mubr.msk.bf16.mxu0 %vm269_vm1, %v264_v7  ;;  %p3320_p12 = pnand %p3319_p11, %p3459_p5 }
  0x1d   : > { %v2804_v15 = vld [vmem:[%s3487_s19 + $0x90] sm:$0xff]  ;;  %v267_v17 = vpack.c.bf16 %v3514_v14, %v3511_v13  ;;  %v3523_v19 = vld [vmem:[%s3487_s19 + $0xa0] sm:$0xff]  ;;  %3065 = vmatprep.mubr.msk.bf16.mxu1 %vm269_vm1, %v266_v11 }
  0x1e   : > { %3062 = vmatmul.mubr.msk.bf16.vlgmr.msra.gmra.mrb[0].mxu0 %vm269_vm1, %v265_v12  ;;  %v369_v20 = vpack.c.bf16 %v3523_v19, %v2804_v15  ;;  %v479_v22 = vld [vmem:[%s3487_s19 + $0x1] sm:$0xff]  ;;  %v3533_v23 = vld [vmem:[%s3487_s19 + $0x11] sm:$0xff]  ;;  %p3321_p13 = pneg %p3320_p12 }
  0x1f   : > { %3066 = vmatmul.mubr.msk.bf16.vlgmr.msra.gmra.mrb[0].mxu1 %vm269_vm1, %v267_v17  ;;  %3080 = vmatpush3.bf16.msra.mxu0 %v506_v16  ;;  %v487_v24 = vpack.c.bf16 %v3533_v23, %v479_v22  ;;  %v3538_v25 = vld [vmem:[%s3487_s19 + $0x21] sm:$0xff]  ;;  %v3541_v26 = vld [vmem:[%s3487_s19 + $0x31] sm:$0xff]  ;;  %v962_v22 = vpack.c.bf16 %v3501_v9, %v3491_v5  ;;  %v964_v9 = vpack.c.bf16 %v3511_v13, %v3498_v8 }
  0x20   : > { %3070 = vmatpush3.bf16.msra.mxu1 %v388_v18  ;;  %3071 = vmatprep.mubr.msk.bf16.mxu1 %vm269_vm1, %v369_v20  ;;  %v3548_v28 = vld [vmem:[%s3487_s19 + $0xb0] sm:$0xff]  ;;  %v3551_v29 = vld [vmem:[%s3487_s19 + $0xc0] sm:$0xff]  ;;  %v488_v34 = vpack.c.bf16 %v3541_v26, %v3538_v25 }
  0x21   : > { %v3554_v30 = vld [vmem:[%s3487_s19 + $0x41] sm:$0xff]  ;;  %3255 = vmatprep.subr.msk.bf16.mxu1 %vm282_vm0, %v2830_v21  ;;  %3081 = vmatprep.mubr.msk.bf16.mxu0 %vm269_vm1, %v487_v24  ;;  %v3559_v31 = vld [vmem:[%s3487_s19 + $0xd0] sm:$0xff]  ;;  %v370_v35 = vpack.c.bf16 %v3551_v29, %v3548_v28 }
  0x22   : > { %v3562_v32 = vld [vmem:[%s3487_s19 + $0xe0] sm:$0xff]  ;;  %v3565_v33 = vld [vmem:[%s3487_s19 + $0x51] sm:$0xff]  ;;  %3256 = vmatprep.subr.msk.bf16.mxu0 %vm282_vm0, %v2843_v27 }
  0x23   : > { %v489_v36 = vpack.c.bf16 %v3565_v33, %v3554_v30  ;;  %v371_v37 = vpack.c.bf16 %v3562_v32, %v3559_v31  ;;  %v3587_v42 = vld [vmem:[%s3487_s19 + $0xf0] sm:$0xff]  ;;  %v3591_v43 = vld [vmem:[%s3487_s19 + $0x61] sm:$0xff] }
  0x24   : > { %v3594_v44 = vld [vmem:[%s3487_s19 + $0x71] sm:$0xff]  ;;  %v3598_v45 = vld [vmem:[%s3487_s19 + $0x100] sm:$0xff] }
  0x25   : > { %v2835_v46 = vld [vmem:[%s3487_s19 + $0x1b0] sm:$0xff]  ;;  %v2836_v47 = vld [vmem:[%s3487_s19 + $0x1c0] sm:$0xff]  ;;  %v490_v50 = vpack.c.bf16 %v3594_v44, %v3591_v43  ;;  %v372_v51 = vpack.c.bf16 %v3598_v45, %v3587_v42 }
  0x26   : > { %3082 = vmatmul.mubr.msk.bf16.vlgmr.msra.gmra.mrb[4].mxu0 %vm269_vm1, %v488_v34  ;;  %v2822_v48 = vld [vmem:[%s3487_s19 + $0x120] sm:$0xff]  ;;  %v2823_v49 = vld [vmem:[%s3487_s19 + $0x130] sm:$0xff]  ;;  %v725_v52 = vpack.c.bf16 %v2836_v47, %v2835_v46  ;;  %v1199_v46 = vpack.c.bf16 %v3538_v25, %v3533_v23  ;;  %v1081_v47 = vpack.c.bf16 %v3548_v28, %v3523_v19  ;;  %v1201_v23 = vpack.c.bf16 %v3591_v43, %v3565_v33 }
  0x27   : > { %3072 = vmatmul.mubr.msk.bf16.vlgmr.msra.gmra.mrb[4].mxu1 %vm269_vm1, %v370_v35  ;;  %3085 = vmatprep.mubr.msk.bf16.mxu0 %vm269_vm1, %v489_v36  ;;  %v606_v53 = vpack.c.bf16 %v2823_v49, %v2822_v48  ;;  %v2824_v54 = vld [vmem:[%s3487_s19 + $0x140] sm:$0xff]  ;;  %v2837_v55 = vld [vmem:[%s3487_s19 + $0x1d0] sm:$0xff]  ;;  %v1200_v48 = vpack.c.bf16 %v3554_v30, %v3541_v26  ;;  %v1083_v19 = vpack.c.bf16 %v3587_v42, %v3562_v32 }
  0x28   : > { %3090 = vmatpush3.bf16.msra.mxu1 %v625_v38  ;;  %3075 = vmatprep.mubr.msk.bf16.mxu1 %vm269_vm1, %v371_v37  ;;  %v2838_v56 = vld [vmem:[%s3487_s19 + $0x1e0] sm:$0xff]  ;;  %v2825_v57 = vld [vmem:[%s3487_s19 + $0x150] sm:$0xff]  ;;  %v963_v37 = vpack.c.bf16 %v3494_v6, %v3504_v10 }
  0x29   : > { %3100 = vmatpush3.bf16.msra.mxu0 %v744_v39  ;;  %3257 = vmatprep.subr.msk.bf16.mxu1 %vm282_vm0, %v2856_v40  ;;  %v2839_v58 = vld [vmem:[%s3487_s19 + $0x1f0] sm:$0xff]  ;;  %v2840_v59 = vld [vmem:[%s3487_s19 + $0x200] sm:$0xff]  ;;  %v726_v62 = vpack.c.bf16 %v2838_v56, %v2837_v55  ;;  %v607_v63 = vpack.c.bf16 %v2825_v57, %v2824_v54  ;;  %v1100_v39 = vsel %vm282_vm0, %v2882_v4, 0 }
  0x2a   : > { %3258 = vmatprep.subr.msk.bf16.mxu0 %vm282_vm0, %v2869_v41  ;;  %v2826_v60 = vld [vmem:[%s3487_s19 + $0x160] sm:$0xff]  ;;  %v2827_v61 = vld [vmem:[%s3487_s19 + $0x170] sm:$0xff]  ;;  %v727_v0 = vpack.c.bf16 %v2840_v59, %v2839_v58 }
  0x2b   : > { %v608_v1 = vpack.c.bf16 %v2827_v61, %v2826_v60  ;;  %v2841_v7 = vld [vmem:[%s3487_s19 + $0x210] sm:$0xff]  ;;  %v2842_v11 = vld [vmem:[%s3487_s19 + $0x220] sm:$0xff] }
  0x2c   : > { %v2895_v12 = vld [vmem:[%s4297_s1 + $0x10] sm:$0x3]  ;;  %v2828_v15 = vld [vmem:[%s3487_s19 + $0x180] sm:$0xff]  ;;  %v728_v20 = vpack.c.bf16 %v2842_v11, %v2841_v7  ;;  %v3382_v7 = vmov 0.0  }
  0x2d   : > { %v2829_v16 = vld [vmem:[%s3487_s19 + $0x190] sm:$0xff]  ;;  %v2848_v17 = vld [vmem:[%s3487_s19 + $0x121] sm:$0xff]  ;;  %v1218_v40 = vsel %vm282_vm0, %v2895_v12, 0  ;;  %1398 = vst.msk [vmem:[#allocation2] sm:$0xff] %vm351_vm2, %v3382_v7  ;;  %1402 = vst.msk [vmem:[#allocation2 + $0x90] sm:$0xff] %vm351_vm2, %v3382_v7 }
  0x2e   : > { %3086 = vmatmul.mubr.msk.bf16.gmra.mrb[8].mxu0 %vm269_vm1, %v490_v50  ;;  %v2849_v18 = vld [vmem:[%s3487_s19 + $0x131] sm:$0xff]  ;;  %v609_v21 = vpack.c.bf16 %v2829_v16, %v2828_v15  ;;  %v2850_v27 = vld [vmem:[%s3487_s19 + $0x141] sm:$0xff]  ;;  %1406 = vst.msk [vmem:[#allocation2 + $0x10] sm:$0x1] %vm1404_vm4, %v3382_v7  ;;  %1407 = vst.msk [vmem:[#allocation2 + $0x20] sm:$0x1] %vm1404_vm4, %v3382_v7 }
  0x2f   : > { %3076 = vmatmul.mubr.msk.bf16.gmra.mrb[8].mxu1 %vm269_vm1, %v372_v51  ;;  %3101 = vmatprep.mubr.msk.bf16.mxu0 %vm269_vm1, %v725_v52  ;;  %v843_v24 = vpack.c.bf16 %v2849_v18, %v2848_v17  ;;  %v2851_v34 = vld [vmem:[%s3487_s19 + $0x151] sm:$0xff]  ;;  %v2852_v35 = vld [vmem:[%s3487_s19 + $0x161] sm:$0xff]  ;;  %1408 = vst.msk [vmem:[#allocation2 + $0x30] sm:$0x1] %vm1404_vm4, %v3382_v7  ;;  %1409 = vst.msk [vmem:[#allocation2 + $0x40] sm:$0x1] %vm1404_vm4, %v3382_v7 }
  0x30   : > { %3091 = vmatprep.mubr.msk.bf16.mxu1 %vm269_vm1, %v606_v53  ;;  %v2853_v36 = vld [vmem:[%s3487_s19 + $0x171] sm:$0xff]  ;;  %v844_v5 = vpack.c.bf16 %v2851_v34, %v2850_v27  ;;  %v2868_v41 = vld [vmem:[%s3487_s19 + $0x80] sm:$0xff]  ;;  %1410 = vst.msk [vmem:[#allocation2 + $0x50] sm:$0x1] %vm1404_vm4, %v3382_v7  ;;  %1411 = vst.msk [vmem:[#allocation2 + $0x60] sm:$0x1] %vm1404_vm4, %v3382_v7 }
  0x31   : > { %v845_v38 = vpack.c.bf16 %v2853_v36, %v2852_v35  ;;  %v2854_v6 = vld [vmem:[%s3487_s19 + $0x181] sm:$0xff]  ;;  %v2855_v10 = vld [vmem:[%s3487_s19 + $0x191] sm:$0xff]  ;;  %v965_v8 = vpack.c.bf16 %v2868_v41, %v3514_v14  ;;  %v1082_v14 = vpack.c.bf16 %v3559_v31, %v3551_v29  ;;  %1412 = vst.msk [vmem:[#allocation2 + $0x70] sm:$0x1] %vm1404_vm4, %v3382_v7  ;;  %1413 = vst.msk [vmem:[#allocation2 + $0x80] sm:$0x1] %vm1404_vm4, %v3382_v7 }
  0x32   : > { %v846_v13 = vpack.c.bf16 %v2855_v10, %v2854_v6  ;;  %v2894_v25 = vld [vmem:[%s3487_s19 + $0x81] sm:$0xff]  ;;  %v2881_v28 = vld [vmem:[%s3487_s19 + $0x110] sm:$0xff]  ;;  %1416 = vst.msk [vmem:[#allocation2 + $0x19] sm:$0x1] %vm1404_vm4, %v3382_v7  ;;  %1417 = vst.msk [vmem:[#allocation2 + $0x29] sm:$0x1] %vm1404_vm4, %v3382_v7 }
  0x33   : > { %v1202_v26 = vpack.c.bf16 %v2894_v25, %v3594_v44  ;;  %v1084_v29 = vpack.c.bf16 %v2881_v28, %v3598_v45  ;;  %v1446_v31 = vld [vmem:[%s4298_s2] sm:$0xf]  ;;  %v2904_v32 = vld [vmem:[%s4298_s2 + $0x4] sm:$0xf]  ;;  %1418 = vst.msk [vmem:[#allocation2 + $0x39] sm:$0x1] %vm1404_vm4, %v3382_v7 }
  0x34   : > { %v1461_v43 = vsel %vm1459_vm3, %v1446_v31, 0  ;;  %v1563_v44 = vsel %vm1459_vm3, %v2904_v32, 0  ;;  %1419 = vst.msk [vmem:[#allocation2 + $0x49] sm:$0x1] %vm1404_vm4, %v3382_v7  ;;  %1420 = vst.msk [vmem:[#allocation2 + $0x59] sm:$0x1] %vm1404_vm4, %v3382_v7 }
  0x35   : > { %1421 = vst.msk [vmem:[#allocation2 + $0x69] sm:$0x1] %vm1404_vm4, %v3382_v7  ;;  %1422 = vst.msk [vmem:[#allocation2 + $0x79] sm:$0x1] %vm1404_vm4, %v3382_v7 }
  0x36   : > { %3102 = vmatmul.mubr.msk.bf16.vlgmr.msra.gmra.mrb[12].mxu0 %vm269_vm1, %v726_v62  ;;  %1423 = vst.msk [vmem:[#allocation2 + $0x89] sm:$0x1] %vm1404_vm4, %v3382_v7  ;;  %1405 = vst.msk [vmem:[#allocation2] sm:$0x1] %vm1404_vm4, %v3382_v7 }
  0x37   : > { %3092 = vmatmul.mubr.msk.bf16.vlgmr.msra.gmra.mrb[12].mxu1 %vm269_vm1, %v607_v63  ;;  %3105 = vmatprep.mubr.msk.bf16.mxu0 %vm269_vm1, %v727_v0  ;;  %1400 = vst.msk [vmem:[#allocation2 + $0x8] sm:$0x3] %vm1399_vm5, %v3382_v7  ;;  %1403 = vst.msk [vmem:[#allocation2 + $0x98] sm:$0x3] %vm1399_vm5, %v3382_v7 }
  0x38   : > { %3095 = vmatprep.mubr.msk.bf16.mxu1 %vm269_vm1, %v608_v1  ;;  %3110 = vmatpush3.bf16.msra.mxu1 %v862_v2  ;;  %1414 = vst.msk [vmem:[#allocation2 + $0x90] sm:$0x1] %vm1404_vm4, %v3382_v7  ;;  %1415 = vst.msk [vmem:[#allocation2 + $0x9] sm:$0x1] %vm1404_vm4, %v3382_v7 }
  0x39   : > { %3120 = vmatpush3.bf16.msra.mxu0 %v981_v3  ;;  %3259 = vmatprep.subr.msk.bf16.mxu1 %vm282_vm0, %v2882_v4  ;;  %1424 = vst.msk [vmem:[#allocation2 + $0x99] sm:$0x1] %vm1404_vm4, %v3382_v7 }
  0x3a   : > { %3260 = vmatprep.subr.msk.bf16.mxu0 %vm282_vm0, %v2895_v12 }
  0x3e   : > { %3106 = vmatmul.mubr.msk.bf16.gmra.mrb[16].mxu0 %vm269_vm1, %v728_v20 }
  0x3f   : > { %3096 = vmatmul.mubr.msk.bf16.gmra.mrb[16].mxu1 %vm269_vm1, %v609_v21  ;;  %3121 = vmatprep.mubr.msk.bf16.mxu0 %vm269_vm1, %v962_v22 }
  0x40   : > { %3111 = vmatprep.mubr.msk.bf16.mxu1 %vm269_vm1, %v843_v24 }
  0x46   : > { %3122 = vmatmul.mubr.msk.bf16.vlgmr.msra.gmra.mrb[20].mxu0 %vm269_vm1, %v963_v37 }
  0x47   : > { %3112 = vmatmul.mubr.msk.bf16.vlgmr.msra.gmra.mrb[20].mxu1 %vm269_vm1, %v844_v5  ;;  %3125 = vmatprep.mubr.msk.bf16.mxu0 %vm269_vm1, %v964_v9 }
  0x48   : > { %3115 = vmatprep.mubr.msk.bf16.mxu1 %vm269_vm1, %v845_v38  ;;  %3130 = vmatpush3.bf16.msra.mxu1 %v1100_v39 }
  0x49   : > { %3140 = vmatpush3.bf16.msra.mxu0 %v1218_v40  ;;  %3261 = vmatprep.subr.msk.bf16.mxu1 %vm1459_vm3, %v1446_v31 }
  0x4a   : > { %3262 = vmatprep.subr.msk.bf16.mxu0 %vm1459_vm3, %v2904_v32 }
  0x4e   : > { %3126 = vmatmul.mubr.msk.bf16.gmra.mrb[24].mxu0 %vm269_vm1, %v965_v8 }
  0x4f   : > { %3116 = vmatmul.mubr.msk.bf16.gmra.mrb[24].mxu1 %vm269_vm1, %v846_v13  ;;  %3141 = vmatprep.mubr.msk.bf16.mxu0 %vm269_vm1, %v1199_v46 }
  0x50   : > { %3131 = vmatprep.mubr.msk.bf16.mxu1 %vm269_vm1, %v1081_v47 }
  0x56   : > { %3142 = vmatmul.mubr.msk.bf16.vlgmr.msra.gmra.mrb[28].mxu0 %vm269_vm1, %v1200_v48 }
  0x57   : > { %3132 = vmatmul.mubr.msk.bf16.vlgmr.msra.gmra.mrb[28].mxu1 %vm269_vm1, %v1082_v14  ;;  %3145 = vmatprep.mubr.msk.bf16.mxu0 %vm269_vm1, %v1201_v23 }
  0x58   : > { %3135 = vmatprep.mubr.msk.bf16.mxu1 %vm269_vm1, %v1083_v19  ;;  %3150 = vmatpush3.bf16.msra.mxu1 %v1461_v43 }
  0x59   : > { %3160 = vmatpush3.bf16.msra.mxu0 %v1563_v44 }
  0x5e   : > { %3146 = vmatmul.mubr.msk.bf16.gmra.mrb[32].mxu0 %vm269_vm1, %v1202_v26 }
  0x5f   : > { %3136 = vmatmul.mubr.msk.bf16.gmra.mrb[32].mxu1 %vm269_vm1, %v1084_v29 }
  0xf1   : > { %v3063_v30 = vpop.f32.mrb[0].mxu0 }
  0xf2   : > { %354 = vst.msk [vmem:[#allocation3 + $0x10] sm:$0xff] %vm351_vm2, %v3063_v30  ;;  %v3067_v33 = vpop.f32.mrb[0].mxu1  ;;  %v320_v42 = vpop.f32.mrb[1].mxu0  ;;  %v3755_v30 = vld [vmem:[%s4298_s2 + $0x8] sm:$0xf] }
  0xf3   : > { %358 = vst.msk [vmem:[#allocation3 + $0x30] sm:$0xff] %vm351_vm2, %v3067_v33  ;;  %352 = vst.msk [vmem:[#allocation3] sm:$0xff] %vm351_vm2, %v320_v42  ;;  %v336_v45 = vpop.f32.mrb[1].mxu1  ;;  %v3064_v49 = vpop.f32.mrb[2].mxu0  ;;  %3263 = vmatprep.subr.msk.bf16.mxu1 %vm1459_vm3, %v3755_v30 }
  0xf4   : > { %356 = vst.msk [vmem:[#allocation3 + $0x20] sm:$0xff] %vm351_vm2, %v336_v45  ;;  %355 = vst.msk [vmem:[#allocation3 + $0x18] sm:$0xff] %vm351_vm2, %v3064_v49  ;;  %v3068_v50 = vpop.f32.mrb[2].mxu1  ;;  %v323_v51 = vpop.f32.mrb[3].mxu0 }
  0xf5   : > { %359 = vst.msk [vmem:[#allocation3 + $0x38] sm:$0xff] %vm351_vm2, %v3068_v50  ;;  %353 = vst.msk [vmem:[#allocation3 + $0x8] sm:$0xff] %vm351_vm2, %v323_v51  ;;  %v339_v52 = vpop.f32.mrb[3].mxu1 }
  0xf6   : > { %357 = vst.msk [vmem:[#allocation3 + $0x28] sm:$0xff] %vm351_vm2, %v339_v52 }
  0xf9   : > { %v457_v53 = vld [vmem:[#allocation3 + $0x10] sm:$0xff]  ;;  %v3083_v54 = vpop.f32.mrb[4].mxu0 }
  0xfa   : > { %v3073_v55 = vpop.f32.mrb[4].mxu1  ;;  %v455_v56 = vld [vmem:[#allocation3] sm:$0xff]  ;;  %v542_v57 = vpop.f32.mrb[5].mxu0  ;;  %v461_v15 = vld [vmem:[#allocation3 + $0x30] sm:$0xff] }
  0xfb   : > { %v465_v58 = vadd.f32 %v3073_v55, %v457_v53  ;;  %v424_v59 = vpop.f32.mrb[5].mxu1  ;;  %v458_v60 = vld [vmem:[#allocation3 + $0x18] sm:$0xff]  ;;  %v3710_v61 = vpop.f32.mrb[6].mxu0  ;;  %v459_v20 = vld [vmem:[#allocation3 + $0x20] sm:$0xff] }
  0xfc   : > { %v463_v62 = vadd.f32 %v455_v56, %v424_v59  ;;  %v3074_v63 = vpop.f32.mrb[6].mxu1  ;;  %v456_v0 = vld [vmem:[#allocation3 + $0x8] sm:$0xff]  ;;  %v3712_v1 = vpop.f32.mrb[7].mxu0  ;;  %v462_v34 = vld [vmem:[#allocation3 + $0x38] sm:$0xff] }
  0xfd   : > { %473 = vst.msk [vmem:[#allocation3 + $0x10] sm:$0xff] %vm351_vm2, %v465_v58  ;;  %v466_v2 = vadd.f32 %v3074_v63, %v458_v60  ;;  %v427_v3 = vpop.f32.mrb[7].mxu1  ;;  %v460_v38 = vld [vmem:[#allocation3 + $0x28] sm:$0xff] }
  0xfe   : > { %471 = vst.msk [vmem:[#allocation3] sm:$0xff] %vm351_vm2, %v463_v62  ;;  %v464_v4 = vadd.f32 %v456_v0, %v427_v3  ;;  %v3770_v62 = vld [vmem:[%s4298_s2 + $0xc] sm:$0xf] }
  0xff   : > { %474 = vst.msk [vmem:[#allocation3 + $0x18] sm:$0xff] %vm351_vm2, %v466_v2  ;;  %3264 = vmatprep.subr.msk.bf16.mxu0 %vm1459_vm3, %v3770_v62 }
 0x100   : > { %472 = vst.msk [vmem:[#allocation3 + $0x8] sm:$0xff] %vm351_vm2, %v464_v4 }
 0x101   : > { %v3087_v11 = vpop.f32.mrb[8].mxu0 }
 0x102   : > { %v3077_v12 = vpop.f32.mrb[8].mxu1  ;;  %v558_v16 = vpop.f32.mrb[9].mxu0 }
 0x103   : > { %v469_v17 = vadd.f32 %v3077_v12, %v461_v15  ;;  %v440_v18 = vpop.f32.mrb[9].mxu1  ;;  %v3088_v21 = vpop.f32.mrb[10].mxu0 }
 0x104   : > { %v575_v22 = vld [vmem:[#allocation3 + $0x10] sm:$0xff]  ;;  %v467_v24 = vadd.f32 %v459_v20, %v440_v18  ;;  %v3078_v27 = vpop.f32.mrb[10].mxu1  ;;  %v561_v35 = vpop.f32.mrb[11].mxu0 }
 0x105   : > { %v583_v36 = vadd.f32 %v3083_v54, %v575_v22  ;;  %477 = vst.msk [vmem:[#allocation3 + $0x30] sm:$0xff] %vm351_vm2, %v469_v17  ;;  %v573_v37 = vld [vmem:[#allocation3] sm:$0xff]  ;;  %v470_v5 = vadd.f32 %v3078_v27, %v462_v34  ;;  %v443_v9 = vpop.f32.mrb[11].mxu1 }
 0x106   : > { %v581_v39 = vadd.f32 %v573_v37, %v542_v57  ;;  %475 = vst.msk [vmem:[#allocation3 + $0x20] sm:$0xff] %vm351_vm2, %v467_v24  ;;  %v576_v40 = vld [vmem:[#allocation3 + $0x18] sm:$0xff]  ;;  %v468_v41 = vadd.f32 %v460_v38, %v443_v9 }
 0x107   : > { %591 = vst.msk [vmem:[#allocation3 + $0x10] sm:$0xff] %vm351_vm2, %v583_v36  ;;  %v584_v6 = vadd.f32 %v3710_v61, %v576_v40  ;;  %478 = vst.msk [vmem:[#allocation3 + $0x38] sm:$0xff] %vm351_vm2, %v470_v5  ;;  %v574_v10 = vld [vmem:[#allocation3 + $0x8] sm:$0xff] }
 0x108   : > { %589 = vst.msk [vmem:[#allocation3] sm:$0xff] %vm351_vm2, %v581_v39  ;;  %v582_v8 = vadd.f32 %v574_v10, %v3712_v1  ;;  %476 = vst.msk [vmem:[#allocation3 + $0x28] sm:$0xff] %vm351_vm2, %v468_v41 }
 0x109   : > { %592 = vst.msk [vmem:[#allocation3 + $0x18] sm:$0xff] %vm351_vm2, %v584_v6  ;;  %v3103_v13 = vpop.f32.mrb[12].mxu0 }
 0x10a   : > { %590 = vst.msk [vmem:[#allocation3 + $0x8] sm:$0xff] %vm351_vm2, %v582_v8  ;;  %v3093_v46 = vpop.f32.mrb[12].mxu1  ;;  %v780_v47 = vpop.f32.mrb[13].mxu0 }
 0x10b   : > { %v661_v48 = vpop.f32.mrb[13].mxu1  ;;  %v3104_v14 = vpop.f32.mrb[14].mxu0 }
 0x10c   : > { %v579_v23 = vld [vmem:[#allocation3 + $0x30] sm:$0xff]  ;;  %v3094_v19 = vpop.f32.mrb[14].mxu1  ;;  %v3750_v25 = vpop.f32.mrb[15].mxu0 }
 0x10d   : > { %v587_v28 = vadd.f32 %v3087_v11, %v579_v23  ;;  %v577_v26 = vld [vmem:[#allocation3 + $0x20] sm:$0xff]  ;;  %v664_v29 = vpop.f32.mrb[15].mxu1 }
 0x10e   : > { %v585_v31 = vadd.f32 %v577_v26, %v558_v16  ;;  %v580_v32 = vld [vmem:[#allocation3 + $0x38] sm:$0xff]  ;;  %v694_v33 = vld [vmem:[#allocation3 + $0x10] sm:$0xff] }
 0x10f   : > { %595 = vst.msk [vmem:[#allocation3 + $0x30] sm:$0xff] %vm351_vm2, %v587_v28  ;;  %v588_v42 = vadd.f32 %v3088_v21, %v580_v32  ;;  %v702_v43 = vadd.f32 %v3093_v46, %v694_v33  ;;  %v578_v44 = vld [vmem:[#allocation3 + $0x28] sm:$0xff]  ;;  %v692_v45 = vld [vmem:[#allocation3] sm:$0xff] }
 0x110   : > { %593 = vst.msk [vmem:[#allocation3 + $0x20] sm:$0xff] %vm351_vm2, %v585_v31  ;;  %v586_v49 = vadd.f32 %v578_v44, %v561_v35  ;;  %v700_v50 = vadd.f32 %v692_v45, %v661_v48  ;;  %v695_v51 = vld [vmem:[#allocation3 + $0x18] sm:$0xff] }
 0x111   : > { %596 = vst.msk [vmem:[#allocation3 + $0x38] sm:$0xff] %vm351_vm2, %v588_v42  ;;  %710 = vst.msk [vmem:[#allocation3 + $0x10] sm:$0xff] %vm351_vm2, %v702_v43  ;;  %v703_v52 = vadd.f32 %v3094_v19, %v695_v51  ;;  %v693_v53 = vld [vmem:[#allocation3 + $0x8] sm:$0xff]  ;;  %v3107_v54 = vpop.f32.mrb[16].mxu0 }
 0x112   : > { %594 = vst.msk [vmem:[#allocation3 + $0x28] sm:$0xff] %vm351_vm2, %v586_v49  ;;  %708 = vst.msk [vmem:[#allocation3] sm:$0xff] %vm351_vm2, %v700_v50  ;;  %v701_v55 = vadd.f32 %v693_v53, %v664_v29  ;;  %v3097_v56 = vpop.f32.mrb[16].mxu1  ;;  %v796_v57 = vpop.f32.mrb[17].mxu0 }
 0x113   : > { %711 = vst.msk [vmem:[#allocation3 + $0x18] sm:$0xff] %vm351_vm2, %v703_v52  ;;  %v677_v58 = vpop.f32.mrb[17].mxu1  ;;  %v3108_v59 = vpop.f32.mrb[18].mxu0 }
 0x114   : > { %709 = vst.msk [vmem:[#allocation3 + $0x8] sm:$0xff] %vm351_vm2, %v701_v55  ;;  %v3098_v60 = vpop.f32.mrb[18].mxu1  ;;  %v799_v61 = vpop.f32.mrb[19].mxu0 }
 0x115   : > { %v680_v63 = vpop.f32.mrb[19].mxu1 }
 0x116   : > { %v698_v0 = vld [vmem:[#allocation3 + $0x30] sm:$0xff] }
 0x117   : > { %v706_v1 = vadd.f32 %v3097_v56, %v698_v0  ;;  %v696_v2 = vld [vmem:[#allocation3 + $0x20] sm:$0xff] }
 0x118   : > { %v704_v3 = vadd.f32 %v696_v2, %v677_v58  ;;  %v699_v4 = vld [vmem:[#allocation3 + $0x38] sm:$0xff]  ;;  %v813_v7 = vld [vmem:[#allocation3 + $0x10] sm:$0xff] }
 0x119   : > { %714 = vst.msk [vmem:[#allocation3 + $0x30] sm:$0xff] %vm351_vm2, %v706_v1  ;;  %v707_v11 = vadd.f32 %v3098_v60, %v699_v4  ;;  %v821_v12 = vadd.f32 %v3103_v13, %v813_v7  ;;  %v697_v15 = vld [vmem:[#allocation3 + $0x28] sm:$0xff]  ;;  %v811_v16 = vld [vmem:[#allocation3] sm:$0xff]  ;;  %v3775_v17 = vpop.f32.mrb[20].mxu0 }
 0x11a   : > { %712 = vst.msk [vmem:[#allocation3 + $0x20] sm:$0xff] %vm351_vm2, %v704_v3  ;;  %v705_v18 = vadd.f32 %v697_v15, %v680_v63  ;;  %v819_v20 = vadd.f32 %v811_v16, %v780_v47  ;;  %v814_v21 = vld [vmem:[#allocation3 + $0x18] sm:$0xff]  ;;  %v3113_v22 = vpop.f32.mrb[20].mxu1  ;;  %v3778_v24 = vpop.f32.mrb[21].mxu0 }
 0x11b   : > { %715 = vst.msk [vmem:[#allocation3 + $0x38] sm:$0xff] %vm351_vm2, %v707_v11  ;;  %829 = vst.msk [vmem:[#allocation3 + $0x10] sm:$0xff] %vm351_vm2, %v821_v12  ;;  %v822_v27 = vadd.f32 %v3104_v14, %v814_v21  ;;  %v812_v34 = vld [vmem:[#allocation3 + $0x8] sm:$0xff]  ;;  %v898_v35 = vpop.f32.mrb[21].mxu1  ;;  %v3782_v36 = vpop.f32.mrb[22].mxu0 }
 0x11c   : > { %713 = vst.msk [vmem:[#allocation3 + $0x28] sm:$0xff] %vm351_vm2, %v705_v18  ;;  %827 = vst.msk [vmem:[#allocation3] sm:$0xff] %vm351_vm2, %v819_v20  ;;  %v820_v37 = vadd.f32 %v812_v34, %v3750_v25  ;;  %v3114_v5 = vpop.f32.mrb[22].mxu1  ;;  %v3787_v9 = vpop.f32.mrb[23].mxu0 }
 0x11d   : > { %830 = vst.msk [vmem:[#allocation3 + $0x18] sm:$0xff] %vm351_vm2, %v822_v27  ;;  %v901_v38 = vpop.f32.mrb[23].mxu1 }
 0x11e   : > { %828 = vst.msk [vmem:[#allocation3 + $0x8] sm:$0xff] %vm351_vm2, %v820_v37 }
 0x120   : > { %v817_v39 = vld [vmem:[#allocation3 + $0x30] sm:$0xff] }
 0x121   : > { %v825_v40 = vadd.f32 %v3107_v54, %v817_v39  ;;  %v815_v41 = vld [vmem:[#allocation3 + $0x20] sm:$0xff]  ;;  %v3791_v6 = vpop.f32.mrb[24].mxu0 }
 0x122   : > { %v823_v10 = vadd.f32 %v815_v41, %v796_v57  ;;  %v818_v8 = vld [vmem:[#allocation3 + $0x38] sm:$0xff]  ;;  %v931_v13 = vld [vmem:[#allocation3 + $0x10] sm:$0xff]  ;;  %v3117_v46 = vpop.f32.mrb[24].mxu1  ;;  %v3793_v47 = vpop.f32.mrb[25].mxu0 }
 0x123   : > { %833 = vst.msk [vmem:[#allocation3 + $0x30] sm:$0xff] %vm351_vm2, %v825_v40  ;;  %v826_v48 = vadd.f32 %v3108_v59, %v818_v8  ;;  %v939_v14 = vadd.f32 %v3113_v22, %v931_v13  ;;  %v816_v23 = vld [vmem:[#allocation3 + $0x28] sm:$0xff]  ;;  %v929_v19 = vld [vmem:[#allocation3] sm:$0xff]  ;;  %v914_v25 = vpop.f32.mrb[25].mxu1  ;;  %v3796_v28 = vpop.f32.mrb[26].mxu0 }
 0x124   : > { %831 = vst.msk [vmem:[#allocation3 + $0x20] sm:$0xff] %vm351_vm2, %v823_v10  ;;  %v824_v26 = vadd.f32 %v816_v23, %v799_v61  ;;  %v937_v29 = vadd.f32 %v929_v19, %v898_v35  ;;  %v932_v31 = vld [vmem:[#allocation3 + $0x18] sm:$0xff]  ;;  %v3118_v32 = vpop.f32.mrb[26].mxu1  ;;  %v3799_v33 = vpop.f32.mrb[27].mxu0 }
 0x125   : > { %834 = vst.msk [vmem:[#allocation3 + $0x38] sm:$0xff] %vm351_vm2, %v826_v48  ;;  %947 = vst.msk [vmem:[#allocation3 + $0x10] sm:$0xff] %vm351_vm2, %v939_v14  ;;  %v940_v42 = vadd.f32 %v3114_v5, %v932_v31  ;;  %v930_v43 = vld [vmem:[#allocation3 + $0x8] sm:$0xff]  ;;  %v917_v44 = vpop.f32.mrb[27].mxu1 }
 0x126   : > { %832 = vst.msk [vmem:[#allocation3 + $0x28] sm:$0xff] %vm351_vm2, %v824_v26  ;;  %945 = vst.msk [vmem:[#allocation3] sm:$0xff] %vm351_vm2, %v937_v29  ;;  %v938_v45 = vadd.f32 %v930_v43, %v901_v38 }
 0x127   : > { %948 = vst.msk [vmem:[#allocation3 + $0x18] sm:$0xff] %vm351_vm2, %v940_v42 }
 0x128   : > { %946 = vst.msk [vmem:[#allocation3 + $0x8] sm:$0xff] %vm351_vm2, %v938_v45 }
 0x129   : > { %v3807_v49 = vpop.f32.mrb[28].mxu0 }
 0x12a   : > { %v935_v50 = vld [vmem:[#allocation3 + $0x30] sm:$0xff]  ;;  %v3133_v51 = vpop.f32.mrb[28].mxu1  ;;  %v3809_v52 = vpop.f32.mrb[29].mxu0 }
 0x12b   : > { %v943_v53 = vadd.f32 %v3117_v46, %v935_v50  ;;  %v933_v54 = vld [vmem:[#allocation3 + $0x20] sm:$0xff]  ;;  %v1136_v55 = vpop.f32.mrb[29].mxu1  ;;  %v3811_v56 = vpop.f32.mrb[30].mxu0 }
 0x12c   : > { %v941_v57 = vadd.f32 %v933_v54, %v914_v25  ;;  %v936_v58 = vld [vmem:[#allocation3 + $0x38] sm:$0xff]  ;;  %v1050_v59 = vld [vmem:[#allocation3 + $0x10] sm:$0xff]  ;;  %v3134_v60 = vpop.f32.mrb[30].mxu1  ;;  %v3813_v61 = vpop.f32.mrb[31].mxu0 }
 0x12d   : > { %951 = vst.msk [vmem:[#allocation3 + $0x30] sm:$0xff] %vm351_vm2, %v943_v53  ;;  %v944_v63 = vadd.f32 %v3118_v32, %v936_v58  ;;  %v1058_v0 = vadd.f32 %v3775_v17, %v1050_v59  ;;  %v934_v1 = vld [vmem:[#allocation3 + $0x28] sm:$0xff]  ;;  %v1048_v2 = vld [vmem:[#allocation3] sm:$0xff]  ;;  %v1139_v3 = vpop.f32.mrb[31].mxu1 }
 0x12e   : > { %949 = vst.msk [vmem:[#allocation3 + $0x20] sm:$0xff] %vm351_vm2, %v941_v57  ;;  %v942_v4 = vadd.f32 %v934_v1, %v917_v44  ;;  %v1056_v7 = vadd.f32 %v1048_v2, %v3778_v24  ;;  %v1051_v11 = vld [vmem:[#allocation3 + $0x18] sm:$0xff] }
 0x12f   : > { %952 = vst.msk [vmem:[#allocation3 + $0x38] sm:$0xff] %vm351_vm2, %v944_v63  ;;  %1066 = vst.msk [vmem:[#allocation3 + $0x10] sm:$0xff] %vm351_vm2, %v1058_v0  ;;  %v1059_v12 = vadd.f32 %v3782_v36, %v1051_v11  ;;  %v1049_v15 = vld [vmem:[#allocation3 + $0x8] sm:$0xff] }
 0x130   : > { %950 = vst.msk [vmem:[#allocation3 + $0x28] sm:$0xff] %vm351_vm2, %v942_v4  ;;  %1064 = vst.msk [vmem:[#allocation3] sm:$0xff] %vm351_vm2, %v1056_v7  ;;  %v1057_v16 = vadd.f32 %v1049_v15, %v3787_v9 }
 0x131   : > { %1067 = vst.msk [vmem:[#allocation3 + $0x18] sm:$0xff] %vm351_vm2, %v1059_v12  ;;  %v3147_v17 = vpop.f32.mrb[32].mxu0 }
 0x132   : > { %1065 = vst.msk [vmem:[#allocation3 + $0x8] sm:$0xff] %vm351_vm2, %v1057_v16  ;;  %v3137_v18 = vpop.f32.mrb[32].mxu1  ;;  %v1270_v20 = vpop.f32.mrb[33].mxu0 }
 0x133   : > { %v1152_v21 = vpop.f32.mrb[33].mxu1  ;;  %v3148_v22 = vpop.f32.mrb[34].mxu0 }
 0x134   : > { %v1054_v24 = vld [vmem:[#allocation3 + $0x30] sm:$0xff]  ;;  %v3138_v27 = vpop.f32.mrb[34].mxu1  ;;  %v1273_v34 = vpop.f32.mrb[35].mxu0 }
 0x135   : > { %v1062_v35 = vadd.f32 %v3791_v6, %v1054_v24  ;;  %v1052_v36 = vld [vmem:[#allocation3 + $0x20] sm:$0xff]  ;;  %v1155_v37 = vpop.f32.mrb[35].mxu1 }
 0x136   : > { %v1060_v5 = vadd.f32 %v1052_v36, %v3793_v47  ;;  %v1055_v38 = vld [vmem:[#allocation3 + $0x38] sm:$0xff]  ;;  %v1169_v9 = vld [vmem:[#allocation3 + $0x10] sm:$0xff] }
 0x137   : > { %1070 = vst.msk [vmem:[#allocation3 + $0x30] sm:$0xff] %vm351_vm2, %v1062_v35  ;;  %v1063_v39 = vadd.f32 %v3796_v28, %v1055_v38  ;;  %v1177_v40 = vadd.f32 %v3133_v51, %v1169_v9  ;;  %v1053_v41 = vld [vmem:[#allocation3 + $0x28] sm:$0xff]  ;;  %v1167_v10 = vld [vmem:[#allocation3] sm:$0xff] }
 0x138   : > { %1068 = vst.msk [vmem:[#allocation3 + $0x20] sm:$0xff] %vm351_vm2, %v1060_v5  ;;  %v1061_v8 = vadd.f32 %v1053_v41, %v3799_v33  ;;  %v1175_v13 = vadd.f32 %v1167_v10, %v1136_v55  ;;  %v1170_v46 = vld [vmem:[#allocation3 + $0x18] sm:$0xff] }
 0x139   : > { %1071 = vst.msk [vmem:[#allocation3 + $0x38] sm:$0xff] %vm351_vm2, %v1063_v39  ;;  %1185 = vst.msk [vmem:[#allocation3 + $0x10] sm:$0xff] %vm351_vm2, %v1177_v40  ;;  %v1178_v6 = vadd.f32 %v3134_v60, %v1170_v46  ;;  %v1168_v47 = vld [vmem:[#allocation3 + $0x8] sm:$0xff] }
 0x13a   : > { %1069 = vst.msk [vmem:[#allocation3 + $0x28] sm:$0xff] %vm351_vm2, %v1061_v8  ;;  %1183 = vst.msk [vmem:[#allocation3] sm:$0xff] %vm351_vm2, %v1175_v13  ;;  %v1176_v48 = vadd.f32 %v1168_v47, %v1139_v3 }
 0x13b   : > { %1186 = vst.msk [vmem:[#allocation3 + $0x18] sm:$0xff] %vm351_vm2, %v1178_v6 }
 0x13c   : > { %1184 = vst.msk [vmem:[#allocation3 + $0x8] sm:$0xff] %vm351_vm2, %v1176_v48 }
 0x13e   : > { %v1173_v14 = vld [vmem:[#allocation3 + $0x30] sm:$0xff] }
 0x13f   : > { %v1181_v23 = vadd.f32 %v3137_v18, %v1173_v14  ;;  %v1171_v19 = vld [vmem:[#allocation3 + $0x20] sm:$0xff] }
 0x140   : > { %v1179_v25 = vadd.f32 %v1171_v19, %v1152_v21  ;;  %v1174_v28 = vld [vmem:[#allocation3 + $0x38] sm:$0xff]  ;;  %v1287_v26 = vld [vmem:[#allocation3 + $0x10] sm:$0xff] }
 0x141   : > { %1189 = vst.msk [vmem:[#allocation3 + $0x30] sm:$0xff] %vm351_vm2, %v1181_v23  ;;  %v1182_v29 = vadd.f32 %v3138_v27, %v1174_v28  ;;  %v1295_v31 = vadd.f32 %v3807_v49, %v1287_v26  ;;  %v1172_v32 = vld [vmem:[#allocation3 + $0x28] sm:$0xff]  ;;  %v1285_v33 = vld [vmem:[#allocation3] sm:$0xff] }
 0x142   : > { %1187 = vst.msk [vmem:[#allocation3 + $0x20] sm:$0xff] %vm351_vm2, %v1179_v25  ;;  %v1180_v42 = vadd.f32 %v1172_v32, %v1155_v37  ;;  %v1293_v43 = vadd.f32 %v1285_v33, %v3809_v52  ;;  %v1288_v44 = vld [vmem:[#allocation3 + $0x18] sm:$0xff] }
 0x143   : > { %1190 = vst.msk [vmem:[#allocation3 + $0x38] sm:$0xff] %vm351_vm2, %v1182_v29  ;;  %1303 = vst.msk [vmem:[#allocation3 + $0x10] sm:$0xff] %vm351_vm2, %v1295_v31  ;;  %v1296_v45 = vadd.f32 %v3811_v56, %v1288_v44  ;;  %v1286_v50 = vld [vmem:[#allocation3 + $0x8] sm:$0xff] }
 0x144   : > { %1188 = vst.msk [vmem:[#allocation3 + $0x28] sm:$0xff] %vm351_vm2, %v1180_v42  ;;  %1301 = vst.msk [vmem:[#allocation3] sm:$0xff] %vm351_vm2, %v1293_v43  ;;  %v1294_v49 = vadd.f32 %v1286_v50, %v3813_v61 }
 0x145   : > { %1304 = vst.msk [vmem:[#allocation3 + $0x18] sm:$0xff] %vm351_vm2, %v1296_v45 }
 0x146   : > { %1302 = vst.msk [vmem:[#allocation3 + $0x8] sm:$0xff] %vm351_vm2, %v1294_v49 }
 0x148   : > { %v1291_v51 = vld [vmem:[#allocation3 + $0x30] sm:$0xff] }
 0x149   : > { %v1299_v52 = vadd.f32 %v3147_v17, %v1291_v51  ;;  %v1289_v53 = vld [vmem:[#allocation3 + $0x20] sm:$0xff] }
 0x14a   : > { %v1297_v54 = vadd.f32 %v1289_v53, %v1270_v20  ;;  %v1292_v55 = vld [vmem:[#allocation3 + $0x38] sm:$0xff]  ;;  %v3851_v57 = vld [vmem:[#allocation3 + $0x10] sm:$0xff] }
 0x14b   : > { %v3853_v58 = vld [vmem:[#allocation3] sm:$0xff]  ;;  %1307 = vst.msk [vmem:[#allocation3 + $0x30] sm:$0xff] %vm351_vm2, %v1299_v52  ;;  %v1300_v56 = vadd.f32 %v3148_v22, %v1292_v55  ;;  %v1290_v59 = vld [vmem:[#allocation3 + $0x28] sm:$0xff]  ;;  %v1342_v1 = vmul.f32 %v3851_v57, %v3851_v57  ;;  %v1320_v11 = vsel %vm351_vm2, %v3851_v57, 0.0 }
 0x14c   : > { %v1340_v60 = vmul.f32 %v3853_v58, %v3853_v58  ;;  %1305 = vst.msk [vmem:[#allocation3 + $0x20] sm:$0xff] %vm351_vm2, %v1297_v54  ;;  %v1298_v61 = vadd.f32 %v1290_v59, %v1273_v34  ;;  %v3859_v63 = vld [vmem:[#allocation3 + $0x18] sm:$0xff]  ;;  %v1317_v2 = vsel %vm351_vm2, %v3853_v58, 0.0 }
 0x14d   : > { %v3861_v0 = vld [vmem:[#allocation3 + $0x8] sm:$0xff]  ;;  %1308 = vst.msk [vmem:[#allocation3 + $0x38] sm:$0xff] %vm351_vm2, %v1300_v56  ;;  %v1343_v15 = vmul.f32 %v3859_v63, %v3859_v63  ;;  %v1351_v20 = vsel %vm351_vm2, %v1342_v1, 0.0  ;;  %v1322_v21 = vsel %vm351_vm2, %v3859_v63, 0.0 }
 0x14e   : > { %v1318_v3 = vsel %vm351_vm2, %v3861_v0, 0.0  ;;  %v1341_v4 = vmul.f32 %v3861_v0, %v3861_v0  ;;  %1306 = vst.msk [vmem:[#allocation3 + $0x28] sm:$0xff] %vm351_vm2, %v1298_v61  ;;  %v1348_v12 = vsel %vm351_vm2, %v1340_v60, 0.0 }
 0x14f   : > { %v1319_v7 = vadd.f32 %v1318_v3, %v1317_v2  ;;  %v1353_v35 = vsel %vm351_vm2, %v1343_v15, 0.0 }
 0x150   : > { %v1349_v16 = vsel %vm351_vm2, %v1341_v4, 0.0 }
 0x151   : > { %v1321_v17 = vadd.f32 %v1320_v11, %v1319_v7  ;;  %v1350_v18 = vadd.f32 %v1349_v16, %v1348_v12 }
 0x152   : > { %v1315_v24 = vld [vmem:[#allocation3 + $0x30] sm:$0xff] }
 0x153   : > { %v1352_v22 = vadd.f32 %v1351_v20, %v1350_v18  ;;  %v1313_v27 = vld [vmem:[#allocation3 + $0x20] sm:$0xff]  ;;  %v1323_v34 = vadd.f32 %v1322_v21, %v1321_v17  ;;  %v1346_v40 = vmul.f32 %v1315_v24, %v1315_v24  ;;  %v1328_v6 = vsel %vm351_vm2, %v1315_v24, 0.0 }
 0x154   : > { %v1324_v36 = vsel %vm351_vm2, %v1313_v27, 0.0  ;;  %v1344_v37 = vmul.f32 %v1313_v27, %v1313_v27  ;;  %v1316_v9 = vld [vmem:[#allocation3 + $0x38] sm:$0xff] }
 0x155   : > { %v1325_v5 = vadd.f32 %v1324_v36, %v1323_v34  ;;  %v1354_v38 = vadd.f32 %v1353_v35, %v1352_v22  ;;  %v1314_v39 = vld [vmem:[#allocation3 + $0x28] sm:$0xff]  ;;  %v1347_v47 = vmul.f32 %v1316_v9, %v1316_v9  ;;  %v1359_v19 = vsel %vm351_vm2, %v1346_v40, 0.0 }
 0x156   : > { %v1355_v41 = vsel %vm351_vm2, %v1344_v37, 0.0  ;;  %v1326_v10 = vsel %vm351_vm2, %v1314_v39, 0.0  ;;  %v1345_v8 = vmul.f32 %v1314_v39, %v1314_v39  ;;  %v1330_v25 = vsel %vm351_vm2, %v1316_v9, 0.0 }
 0x157   : > { %v1356_v13 = vadd.f32 %v1355_v41, %v1354_v38  ;;  %v1327_v46 = vadd.f32 %v1326_v10, %v1325_v5  ;;  %v1361_v29 = vsel %vm351_vm2, %v1347_v47, 0.0 }
 0x158   : > { %v1357_v48 = vsel %vm351_vm2, %v1345_v8, 0.0 }
 0x159   : > { %v1329_v14 = vadd.f32 %v1328_v6, %v1327_v46  ;;  %v1358_v23 = vadd.f32 %v1357_v48, %v1356_v13 }
 0x15b   : > { %v1331_v28 = vadd.f32 %v1330_v25, %v1329_v14  ;;  %v1360_v26 = vadd.f32 %v1359_v19, %v1358_v23  ;;  %v1681_v25 = vsel %vm1459_vm3, %v3755_v30, 0 }
 0x15d   : > { %v1332_v31 = vrot.slane %v1331_v28, 4  ;;  %v1362_v32 = vadd.f32 %v1361_v29, %v1360_v26  ;;  %v1799_v29 = vsel %vm1459_vm3, %v3770_v62, 0 }
 0x15f   : > { %v1333_v33 = vadd.f32 %v1332_v31, %v1331_v28  ;;  %v1363_v42 = vrot.slane %v1362_v32, 4  ;;  %v2919_v31 = vld [vmem:[%s4298_s2 + $0x10] sm:$0xf] }
 0x161   : > { %v1334_v43 = vrot.slane %v1333_v33, 2  ;;  %v1364_v44 = vadd.f32 %v1363_v42, %v1362_v32  ;;  %v2924_v32 = vld [vmem:[%s4298_s2 + $0x14] sm:$0xf] }
 0x163   : > { %v1335_v45 = vadd.f32 %v1334_v43, %v1333_v33  ;;  %v1365_v50 = vrot.slane %v1364_v44, 2 }
 0x165   : > { %v1336_v49 = vrot.slane %v1335_v45, 1  ;;  %v1366_v51 = vadd.f32 %v1365_v50, %v1364_v44  ;;  %v1654_v44 = vld [vmem:[#allocation2 + $0x2] sm:$0xff] }
 0x167   : > { %v1337_v52 = vadd.f32 %v1336_v49, %v1335_v45  ;;  %v1367_v53 = vrot.slane %v1366_v51, 1 }
 0x169   : > { %v1339_v54 = vmul.f32 0.015625, %v1337_v52  ;;  %v1368_v55 = vadd.f32 %v1367_v53, %v1366_v51 }
 0x16b   : > { %v1369_v56 = vmul.f32 0.015625, %v1368_v55  ;;  %v1370_v59 = vmul.f32 %v1339_v54, %v1339_v54  ;;  %v1372_v1 = vsub.f32 %v3853_v58, %v1339_v54  ;;  %v1373_v2 = vsub.f32 %v3861_v0, %v1339_v54 }
 0x16c   : > { %v1374_v3 = vsub.f32 %v3851_v57, %v1339_v54  ;;  %v1375_v4 = vsub.f32 %v3859_v63, %v1339_v54  ;;  %v1377_v11 = vsub.f32 %v1314_v39, %v1339_v54  ;;  %v1376_v12 = vsub.f32 %v1313_v27, %v1339_v54  ;;  %v1536_v27 = vld [vmem:[#allocation2 + $0x1] sm:$0xff] }
 0x16d   : > { %v1371_v60 = vsub.f32 %v1369_v56, %v1370_v59  ;;  %v1378_v15 = vsub.f32 %v1315_v24, %v1339_v54  ;;  %v1379_v16 = vsub.f32 %v1316_v9, %v1339_v54  ;;  %v1434_v24 = vld [vmem:[#allocation2] sm:$0xff] }
 0x16f   : > { %v1380_v61 = vadd.f32 1e-05, %v1371_v60 }
 0x171   : > { %3314 = vrsqrt.f32 %v1380_v61 }
 0x17b   : > { %v3315_v7 = vpop.eup %3314 }
 0x17c   : > { %v1382_v17 = vmul.f32 %v3315_v7, %v1372_v1  ;;  %v1383_v18 = vmul.f32 %v3315_v7, %v1373_v2  ;;  %v1384_v20 = vmul.f32 %v3315_v7, %v1374_v3  ;;  %v1385_v21 = vmul.f32 %v3315_v7, %v1375_v4  ;;  %v2929_v4 = vld [vmem:[%s4298_s2 + $0x18] sm:$0xf] }
 0x17d   : > { %v1386_v22 = vmul.f32 %v3315_v7, %v1376_v12  ;;  %v1387_v34 = vmul.f32 %v3315_v7, %v1377_v11  ;;  %v1388_v35 = vmul.f32 %v3315_v7, %v1378_v15  ;;  %v1389_v36 = vmul.f32 %v3315_v7, %v1379_v16  ;;  %v2934_v7 = vld [vmem:[%s4298_s2 + $0x1c] sm:$0xf] }
 0x17e   : > { %v1390_v58 = vmax.f32 %v1382_v17, 0.0  ;;  %v1391_v37 = vmax.f32 %v1383_v18, 0.0  ;;  %v1392_v0 = vmax.f32 %v1384_v20, 0.0  ;;  %v1393_v5 = vmax.f32 %v1385_v21, 0.0 }
 0x17f   : > { %v1394_v57 = vmax.f32 %v1386_v22, 0.0  ;;  %v1395_v38 = vmax.f32 %v1387_v34, 0.0  ;;  %v1396_v63 = vmax.f32 %v1388_v35, 0.0  ;;  %v1397_v40 = vmax.f32 %v1389_v36, 0.0 }
 0x180   : > { %1426 = vst.msk [vmem:[#allocation2 + $0x11] sm:$0xff] %vm351_vm2, %v1390_v58  ;;  %1427 = vst.msk [vmem:[#allocation2 + $0x21] sm:$0xff] %vm351_vm2, %v1391_v37  ;;  %v1917_v2 = vsel %vm1459_vm3, %v2919_v31, 0  ;;  %v2035_v3 = vsel %vm1459_vm3, %v2924_v32, 0  ;;  %v2154_v36 = vsel %vm1459_vm3, %v2929_v4, 0  ;;  %v2272_v58 = vsel %vm1459_vm3, %v2934_v7, 0 }
 0x181   : > { %1428 = vst.msk [vmem:[#allocation2 + $0x31] sm:$0xff] %vm351_vm2, %v1392_v0  ;;  %1429 = vst.msk [vmem:[#allocation2 + $0x41] sm:$0xff] %vm351_vm2, %v1393_v5  ;;  %v2939_v37 = vld [vmem:[%s4298_s2 + $0x20] sm:$0xf] }
 0x182   : > { %1430 = vst.msk [vmem:[#allocation2 + $0x51] sm:$0xff] %vm351_vm2, %v1394_v57  ;;  %1431 = vst.msk [vmem:[#allocation2 + $0x61] sm:$0xff] %vm351_vm2, %v1395_v38  ;;  %v2573_v0 = vld [vmem:[%s4299_s3] sm:$0x3] }
 0x183   : > { %1432 = vst.msk [vmem:[#allocation2 + $0x71] sm:$0xff] %vm351_vm2, %v1396_v63  ;;  %1433 = vst.msk [vmem:[#allocation2 + $0x81] sm:$0xff] %vm351_vm2, %v1397_v40  ;;  %v2390_v40 = vsel %vm1459_vm3, %v2939_v37, 0 }
 0x187   : > { %v1435_v9 = vld [vmem:[#allocation2 + $0x10] sm:$0xff]  ;;  %v1436_v41 = vld [vmem:[#allocation2 + $0x20] sm:$0xff] }
 0x188   : > { %v3903_v39 = vld [vmem:[#allocation2 + $0x11] sm:$0xff]  ;;  %v1442_v10 = vpack.c.bf16 %v1435_v9, %v1434_v24  ;;  %v3906_v46 = vld [vmem:[#allocation2 + $0x21] sm:$0xff]  ;;  %v1780_v52 = vpack.c.bf16 %v1436_v41, %v1435_v9  ;;  %v2587_v24 = vsel %vm282_vm0, %v2573_v0, 0 }
 0x189   : > { %v1544_v8 = vpack.c.bf16 %v3903_v39, %v1536_v27  ;;  %v1437_v13 = vld [vmem:[#allocation2 + $0x30] sm:$0xff]  ;;  %v1438_v14 = vld [vmem:[#allocation2 + $0x40] sm:$0xff]  ;;  %v1898_v18 = vpack.c.bf16 %v3906_v46, %v3903_v39 }
 0x18a   : > { %v3908_v6 = vld [vmem:[#allocation2 + $0x31] sm:$0xff]  ;;  %v3910_v47 = vpack.c.bf16 %v1437_v13, %v1436_v41  ;;  %v3916_v19 = vld [vmem:[#allocation2 + $0x41] sm:$0xff]  ;;  %3151 = vmatprep.mubr.msk.bf16.mxu1 %vm351_vm2, %v1442_v10  ;;  %v1781_v60 = vpack.c.bf16 %v1438_v14, %v1437_v13 }
 0x18b   : > { %v3914_v48 = vpack.c.bf16 %v3908_v6, %v3906_v46  ;;  %v1439_v23 = vld [vmem:[#allocation2 + $0x50] sm:$0xff]  ;;  %3161 = vmatprep.mubr.msk.bf16.mxu0 %vm351_vm2, %v1544_v8  ;;  %v1440_v62 = vld [vmem:[#allocation2 + $0x60] sm:$0xff]  ;;  %v1899_v21 = vpack.c.bf16 %v3916_v19, %v3908_v6 }
 0x18c   : > { %v3922_v28 = vpack.c.bf16 %v1439_v23, %v1438_v14  ;;  %v3924_v26 = vld [vmem:[#allocation2 + $0x51] sm:$0xff]  ;;  %3152 = vmatmul.mubr.msk.bf16.vlgmr.msra.gmra.mrb[36].mxu1 %vm351_vm2, %v3910_v47  ;;  %v1542_v42 = vld [vmem:[#allocation2 + $0x61] sm:$0xff]  ;;  %v1782_v1 = vpack.c.bf16 %v1440_v62, %v1439_v23 }
 0x18d   : > { %3162 = vmatmul.mubr.msk.bf16.vlgmr.msra.gmra.mrb[36].mxu0 %vm351_vm2, %v3914_v48  ;;  %v3934_v30 = vpack.c.bf16 %v3924_v26, %v3916_v19  ;;  %3170 = vmatpush3.bf16.msra.mxu1 %v1681_v25  ;;  %v1441_v33 = vld [vmem:[#allocation2 + $0x70] sm:$0xff]  ;;  %v1656_v53 = vld [vmem:[#allocation2 + $0x22] sm:$0xff]  ;;  %v1900_v34 = vpack.c.bf16 %v1542_v42, %v3924_v26 }
 0x18e   : > { %3155 = vmatprep.mubr.msk.bf16.mxu1 %vm351_vm2, %v3922_v28  ;;  %3180 = vmatpush3.bf16.msra.mxu0 %v1799_v29  ;;  %v3946_v43 = vld [vmem:[#allocation2 + $0x71] sm:$0xff]  ;;  %v3950_v50 = vpack.c.bf16 %v1441_v33, %v1440_v62  ;;  %v1658_v55 = vld [vmem:[#allocation2 + $0x42] sm:$0xff] }
 0x18f   : > { %3165 = vmatprep.mubr.msk.bf16.mxu0 %vm351_vm2, %v3934_v30  ;;  %3265 = vmatprep.subr.msk.bf16.mxu1 %vm1459_vm3, %v2919_v31  ;;  %v1655_v45 = vld [vmem:[#allocation2 + $0x12] sm:$0xff]  ;;  %v3953_v49 = vpack.c.bf16 %v3946_v43, %v1542_v42  ;;  %v1660_v11 = vld [vmem:[#allocation2 + $0x62] sm:$0xff] }
 0x190   : > { %3266 = vmatprep.subr.msk.bf16.mxu0 %vm1459_vm3, %v2924_v32  ;;  %v1662_v51 = vpack.c.bf16 %v1655_v45, %v1654_v44  ;;  %v1657_v54 = vld [vmem:[#allocation2 + $0x32] sm:$0xff]  ;;  %v1779_v15 = vld [vmem:[#allocation2 + $0x80] sm:$0xff]  ;;  %v2016_v20 = vpack.c.bf16 %v1656_v53, %v1655_v45 }
 0x191   : > { %v1659_v56 = vld [vmem:[#allocation2 + $0x52] sm:$0xff]  ;;  %v3961_v59 = vpack.c.bf16 %v1657_v54, %v1656_v53  ;;  %v1783_v17 = vpack.c.bf16 %v1779_v15, %v1441_v33  ;;  %v2017_v22 = vpack.c.bf16 %v1658_v55, %v1657_v54  ;;  %v1897_v5 = vld [vmem:[#allocation2 + $0x81] sm:$0xff] }
 0x192   : > { %v3963_v61 = vpack.c.bf16 %v1659_v56, %v1658_v55  ;;  %v1661_v12 = vld [vmem:[#allocation2 + $0x72] sm:$0xff]  ;;  %v2018_v35 = vpack.c.bf16 %v1660_v11, %v1659_v56  ;;  %v2015_v57 = vld [vmem:[#allocation2 + $0x82] sm:$0xff]  ;;  %v1901_v38 = vpack.c.bf16 %v1897_v5, %v3946_v43 }
 0x193   : > { %v1665_v16 = vpack.c.bf16 %v1661_v12, %v1660_v11  ;;  %v2019_v63 = vpack.c.bf16 %v2015_v57, %v1661_v12  ;;  %v2944_v27 = vld [vmem:[%s3487_s19 + $0x1b0] sm:$0xff]  ;;  %v2945_v9 = vld [vmem:[%s3487_s19 + $0x1c0] sm:$0xff] }
 0x194   : > { %3156 = vmatmul.mubr.msk.bf16.gmra.mrb[40].mxu1 %vm351_vm2, %v3950_v50  ;;  %v2134_v39 = vld [vmem:[#allocation2 + $0x90] sm:$0xff]  ;;  %v2569_v10 = vpack.c.bf16 %v2945_v9, %v2944_v27  ;;  %v2947_v6 = vld [vmem:[%s3487_s19 + $0x1e0] sm:$0xff] }
 0x195   : > { %3166 = vmatmul.mubr.msk.bf16.gmra.mrb[40].mxu0 %vm351_vm2, %v3953_v49  ;;  %3171 = vmatprep.mubr.msk.bf16.mxu1 %vm351_vm2, %v1662_v51  ;;  %v2252_v41 = vld [vmem:[#allocation2 + $0x91] sm:$0xff]  ;;  %v2138_v8 = vpack.c.bf16 %v2134_v39, %v1779_v15  ;;  %v2951_v25 = vld [vmem:[%s3487_s19 + $0x220] sm:$0xff] }
 0x196   : > { %3181 = vmatprep.mubr.msk.bf16.mxu0 %vm351_vm2, %v1780_v52  ;;  %v2256_v13 = vpack.c.bf16 %v2252_v41, %v1897_v5  ;;  %v2946_v46 = vld [vmem:[%s3487_s19 + $0x1d0] sm:$0xff] }
 0x197   : > { %v2570_v14 = vpack.c.bf16 %v2947_v6, %v2946_v46  ;;  %v2950_v19 = vld [vmem:[%s3487_s19 + $0x210] sm:$0xff] }
 0x198   : > { %v2572_v26 = vpack.c.bf16 %v2951_v25, %v2950_v19 }
 0x19c   : > { %3172 = vmatmul.mubr.msk.bf16.vlgmr.msra.gmra.mrb[44].mxu1 %vm351_vm2, %v3961_v59 }
 0x19d   : > { %3182 = vmatmul.mubr.msk.bf16.vlgmr.msra.gmra.mrb[44].mxu0 %vm351_vm2, %v1781_v60  ;;  %3175 = vmatprep.mubr.msk.bf16.mxu1 %vm351_vm2, %v3963_v61 }
 0x19e   : > { %3185 = vmatprep.mubr.msk.bf16.mxu0 %vm351_vm2, %v1782_v1  ;;  %3190 = vmatpush3.bf16.msra.mxu1 %v1917_v2 }
 0x19f   : > { %3200 = vmatpush3.bf16.msra.mxu0 %v2035_v3  ;;  %3267 = vmatprep.subr.msk.bf16.mxu1 %vm1459_vm3, %v2929_v4 }
 0x1a0   : > { %3268 = vmatprep.subr.msk.bf16.mxu0 %vm1459_vm3, %v2934_v7 }
 0x1a4   : > { %3176 = vmatmul.mubr.msk.bf16.gmra.mrb[48].mxu1 %vm351_vm2, %v1665_v16 }
 0x1a5   : > { %3186 = vmatmul.mubr.msk.bf16.gmra.mrb[48].mxu0 %vm351_vm2, %v1783_v17  ;;  %3191 = vmatprep.mubr.msk.bf16.mxu1 %vm351_vm2, %v1898_v18 }
 0x1a6   : > { %3201 = vmatprep.mubr.msk.bf16.mxu0 %vm351_vm2, %v2016_v20 }
 0x1ac   : > { %3192 = vmatmul.mubr.msk.bf16.vlgmr.msra.gmra.mrb[52].mxu1 %vm351_vm2, %v1899_v21 }
 0x1ad   : > { %3202 = vmatmul.mubr.msk.bf16.vlgmr.msra.gmra.mrb[52].mxu0 %vm351_vm2, %v2017_v22  ;;  %3195 = vmatprep.mubr.msk.bf16.mxu1 %vm351_vm2, %v1900_v34 }
 0x1ae   : > { %3205 = vmatprep.mubr.msk.bf16.mxu0 %vm351_vm2, %v2018_v35  ;;  %3210 = vmatpush3.bf16.msra.mxu1 %v2154_v36 }
 0x1af   : > { %3220 = vmatpush3.bf16.msra.mxu0 %v2272_v58  ;;  %3269 = vmatprep.subr.msk.bf16.mxu1 %vm1459_vm3, %v2939_v37 }
 0x1b0   : > { %3270 = vmatprep.subr.msk.bf16.mxu0 %vm282_vm0, %v2573_v0 }
 0x1b4   : > { %3196 = vmatmul.mubr.msk.bf16.gmra.mrb[56].mxu1 %vm351_vm2, %v1901_v38 }
 0x1b5   : > { %3206 = vmatmul.mubr.msk.bf16.gmra.mrb[56].mxu0 %vm351_vm2, %v2019_v63  ;;  %3211 = vmatprep.mubr.msk.bf16.mxu1 %vm351_vm2, %v3910_v47  ;;  %v2948_v47 = vld [vmem:[%s3487_s19 + $0x1f0] sm:$0xff] }
 0x1b6   : > { %3221 = vmatprep.mubr.msk.bf16.mxu0 %vm351_vm2, %v3914_v48  ;;  %v2949_v48 = vld [vmem:[%s3487_s19 + $0x200] sm:$0xff]  ;;  %s3324_s19 = scalar_lea.vmem %s3323_s29, 1024 }
 0x1b7   : > { %v2571_v23 = vpack.c.bf16 %v2949_v48, %v2948_v47  ;;  %p3326_p1 = scmp.lt.s32.totalorder %s3324_s19, %s3318_s26 }
 0x1b9   : > { %p3327_p2 = por %p3326_p1, %p3325_p0 }
 0x1bb   : > { %p3328_p3 = pnand %p3327_p2, %p3321_p13 }
 0x1bc   : > { %3212 = vmatmul.mubr.msk.bf16.vlgmr.msra.gmra.mrb[60].mxu1 %vm351_vm2, %v3922_v28  ;;  %v2370_v28 = vld [vmem:[#allocation2 + $0x92] sm:$0xff] }
 0x1bd   : > { %3222 = vmatmul.mubr.msk.bf16.vlgmr.msra.gmra.mrb[60].mxu0 %vm351_vm2, %v3934_v30  ;;  %3215 = vmatprep.mubr.msk.bf16.mxu1 %vm351_vm2, %v3950_v50  ;;  %v2374_v29 = vpack.c.bf16 %v2370_v28, %v2015_v57 }
 0x1be   : > { %3225 = vmatprep.mubr.msk.bf16.mxu0 %vm351_vm2, %v3953_v49  ;;  %3230 = vmatpush3.bf16.msra.mxu1 %v2390_v40 }
 0x1bf   : > { %3240 = vmatpush3.bf16.msra.mxu0 %v2587_v24 }
 0x1c4   : > { %3216 = vmatmul.mubr.msk.bf16.gmra.mrb[64].mxu1 %vm351_vm2, %v2138_v8 }
 0x1c5   : > { %3226 = vmatmul.mubr.msk.bf16.gmra.mrb[64].mxu0 %vm351_vm2, %v2256_v13  ;;  %3231 = vmatprep.mubr.msk.bf16.mxu1 %vm351_vm2, %v3961_v59 }
 0x1c6   : > { %3241 = vmatprep.mubr.msk.bf16.mxu0 %vm269_vm1, %v2569_v10 }
 0x1cc   : > { %3232 = vmatmul.mubr.msk.bf16.vlgmr.msra.gmra.mrb[68].mxu1 %vm351_vm2, %v3963_v61 }
 0x1cd   : > { %3242 = vmatmul.mubr.msk.bf16.vlgmr.msra.gmra.mrb[68].mxu0 %vm269_vm1, %v2570_v14  ;;  %3235 = vmatprep.mubr.msk.bf16.mxu1 %vm351_vm2, %v1665_v16 }
 0x1ce   : > { %3245 = vmatprep.mubr.msk.bf16.mxu0 %vm269_vm1, %v2571_v23 }
 0x1d4   : > { %3236 = vmatmul.mubr.msk.bf16.gmra.mrb[72].mxu1 %vm351_vm2, %v2374_v29 }
 0x1d5   : > { %3246 = vmatmul.mubr.msk.bf16.gmra.mrb[72].mxu0 %vm269_vm1, %v2572_v26 }
 0x25f   : > { %v3153_v30 = vpop.f32.mrb[36].mxu1 }
 0x260   : > { %v3163_v31 = vpop.f32.mrb[36].mxu0  ;;  %1530 = vst.msk [vmem:[#allocation3 + $0x10] sm:$0xff] %vm351_vm2, %v3153_v30  ;;  %v1497_v32 = vpop.f32.mrb[37].mxu1 }
 0x261   : > { %v1599_v62 = vpop.f32.mrb[37].mxu0  ;;  %1528 = vst.msk [vmem:[#allocation3] sm:$0xff] %vm351_vm2, %v1497_v32  ;;  %v3154_v33 = vpop.f32.mrb[38].mxu1 }
 0x262   : > { %v3164_v42 = vpop.f32.mrb[38].mxu0  ;;  %1531 = vst.msk [vmem:[#allocation3 + $0x18] sm:$0xff] %vm351_vm2, %v3154_v33  ;;  %v1500_v43 = vpop.f32.mrb[39].mxu1 }
 0x263   : > { %v1602_v44 = vpop.f32.mrb[39].mxu0  ;;  %1529 = vst.msk [vmem:[#allocation3 + $0x8] sm:$0xff] %vm351_vm2, %v1500_v43 }
 0x267   : > { %v1632_v45 = vld [vmem:[#allocation3 + $0x10] sm:$0xff]  ;;  %v3157_v50 = vpop.f32.mrb[40].mxu1 }
 0x268   : > { %v3167_v49 = vpop.f32.mrb[40].mxu0  ;;  %v1640_v51 = vadd.f32 %v3163_v31, %v1632_v45  ;;  %v1630_v52 = vld [vmem:[#allocation3] sm:$0xff]  ;;  %1534 = vst.msk [vmem:[#allocation3 + $0x30] sm:$0xff] %vm351_vm2, %v3157_v50  ;;  %v1513_v53 = vpop.f32.mrb[41].mxu1 }
 0x269   : > { %v1615_v54 = vpop.f32.mrb[41].mxu0  ;;  %v1638_v55 = vadd.f32 %v1630_v52, %v1599_v62  ;;  %v1633_v56 = vld [vmem:[#allocation3 + $0x18] sm:$0xff]  ;;  %1532 = vst.msk [vmem:[#allocation3 + $0x20] sm:$0xff] %vm351_vm2, %v1513_v53  ;;  %v3158_v59 = vpop.f32.mrb[42].mxu1 }
 0x26a   : > { %v3168_v60 = vpop.f32.mrb[42].mxu0  ;;  %1648 = vst.msk [vmem:[#allocation3 + $0x10] sm:$0xff] %vm351_vm2, %v1640_v51  ;;  %v1641_v61 = vadd.f32 %v3164_v42, %v1633_v56  ;;  %v1631_v1 = vld [vmem:[#allocation3 + $0x8] sm:$0xff]  ;;  %1535 = vst.msk [vmem:[#allocation3 + $0x38] sm:$0xff] %vm351_vm2, %v3158_v59  ;;  %v1516_v2 = vpop.f32.mrb[43].mxu1 }
 0x26b   : > { %v1618_v3 = vpop.f32.mrb[43].mxu0  ;;  %1646 = vst.msk [vmem:[#allocation3] sm:$0xff] %vm351_vm2, %v1638_v55  ;;  %v1639_v4 = vadd.f32 %v1631_v1, %v1602_v44  ;;  %1533 = vst.msk [vmem:[#allocation3 + $0x28] sm:$0xff] %vm351_vm2, %v1516_v2 }
 0x26c   : > { %1649 = vst.msk [vmem:[#allocation3 + $0x18] sm:$0xff] %vm351_vm2, %v1641_v61 }
 0x26d   : > { %1647 = vst.msk [vmem:[#allocation3 + $0x8] sm:$0xff] %vm351_vm2, %v1639_v4 }
 0x26f   : > { %v1636_v7 = vld [vmem:[#allocation3 + $0x30] sm:$0xff]  ;;  %v3173_v11 = vpop.f32.mrb[44].mxu1 }
 0x270   : > { %v3183_v12 = vpop.f32.mrb[44].mxu0  ;;  %v1644_v15 = vadd.f32 %v3167_v49, %v1636_v7  ;;  %v1634_v16 = vld [vmem:[#allocation3 + $0x20] sm:$0xff]  ;;  %v1717_v17 = vpop.f32.mrb[45].mxu1 }
 0x271   : > { %v1835_v18 = vpop.f32.mrb[45].mxu0  ;;  %v1642_v20 = vadd.f32 %v1634_v16, %v1615_v54  ;;  %v1637_v21 = vld [vmem:[#allocation3 + $0x38] sm:$0xff]  ;;  %v1750_v22 = vld [vmem:[#allocation3 + $0x10] sm:$0xff]  ;;  %v3174_v34 = vpop.f32.mrb[46].mxu1 }
 0x272   : > { %v3184_v35 = vpop.f32.mrb[46].mxu0  ;;  %1652 = vst.msk [vmem:[#allocation3 + $0x30] sm:$0xff] %vm351_vm2, %v1644_v15  ;;  %v1645_v36 = vadd.f32 %v3168_v60, %v1637_v21  ;;  %v1635_v58 = vld [vmem:[#allocation3 + $0x28] sm:$0xff]  ;;  %v1758_v37 = vadd.f32 %v3173_v11, %v1750_v22  ;;  %v1748_v0 = vld [vmem:[#allocation3] sm:$0xff]  ;;  %v1720_v5 = vpop.f32.mrb[47].mxu1 }
 0x273   : > { %v1838_v57 = vpop.f32.mrb[47].mxu0  ;;  %1650 = vst.msk [vmem:[#allocation3 + $0x20] sm:$0xff] %vm351_vm2, %v1642_v20  ;;  %v1643_v38 = vadd.f32 %v1635_v58, %v1618_v3  ;;  %v1756_v63 = vadd.f32 %v1748_v0, %v1717_v17  ;;  %v1751_v40 = vld [vmem:[#allocation3 + $0x18] sm:$0xff] }
 0x274   : > { %1653 = vst.msk [vmem:[#allocation3 + $0x38] sm:$0xff] %vm351_vm2, %v1645_v36  ;;  %1766 = vst.msk [vmem:[#allocation3 + $0x10] sm:$0xff] %vm351_vm2, %v1758_v37  ;;  %v1759_v24 = vadd.f32 %v3174_v34, %v1751_v40  ;;  %v1749_v27 = vld [vmem:[#allocation3 + $0x8] sm:$0xff] }
 0x275   : > { %1651 = vst.msk [vmem:[#allocation3 + $0x28] sm:$0xff] %vm351_vm2, %v1643_v38  ;;  %1764 = vst.msk [vmem:[#allocation3] sm:$0xff] %vm351_vm2, %v1756_v63  ;;  %v1757_v9 = vadd.f32 %v1749_v27, %v1720_v5 }
 0x276   : > { %1767 = vst.msk [vmem:[#allocation3 + $0x18] sm:$0xff] %vm351_vm2, %v1759_v24 }
 0x277   : > { %1765 = vst.msk [vmem:[#allocation3 + $0x8] sm:$0xff] %vm351_vm2, %v1757_v9  ;;  %v3177_v39 = vpop.f32.mrb[48].mxu1 }
 0x278   : > { %v3187_v41 = vpop.f32.mrb[48].mxu0  ;;  %v1733_v10 = vpop.f32.mrb[49].mxu1 }
 0x279   : > { %v1851_v8 = vpop.f32.mrb[49].mxu0  ;;  %v1754_v13 = vld [vmem:[#allocation3 + $0x30] sm:$0xff]  ;;  %v3178_v46 = vpop.f32.mrb[50].mxu1 }
 0x27a   : > { %v3188_v6 = vpop.f32.mrb[50].mxu0  ;;  %v1762_v47 = vadd.f32 %v3177_v39, %v1754_v13  ;;  %v1752_v48 = vld [vmem:[#allocation3 + $0x20] sm:$0xff]  ;;  %v1736_v14 = vpop.f32.mrb[51].mxu1 }
 0x27b   : > { %v1854_v23 = vpop.f32.mrb[51].mxu0  ;;  %v1868_v19 = vld [vmem:[#allocation3 + $0x10] sm:$0xff]  ;;  %v1760_v25 = vadd.f32 %v1752_v48, %v1733_v10  ;;  %v1755_v28 = vld [vmem:[#allocation3 + $0x38] sm:$0xff] }
 0x27c   : > { %v1876_v26 = vadd.f32 %v3183_v12, %v1868_v19  ;;  %v1866_v29 = vld [vmem:[#allocation3] sm:$0xff]  ;;  %1770 = vst.msk [vmem:[#allocation3 + $0x30] sm:$0xff] %vm351_vm2, %v1762_v47  ;;  %v1763_v30 = vadd.f32 %v3178_v46, %v1755_v28  ;;  %v1753_v31 = vld [vmem:[#allocation3 + $0x28] sm:$0xff] }
 0x27d   : > { %v1874_v32 = vadd.f32 %v1866_v29, %v1835_v18  ;;  %v1869_v62 = vld [vmem:[#allocation3 + $0x18] sm:$0xff]  ;;  %1768 = vst.msk [vmem:[#allocation3 + $0x20] sm:$0xff] %vm351_vm2, %v1760_v25  ;;  %v1761_v33 = vadd.f32 %v1753_v31, %v1736_v14 }
 0x27e   : > { %1884 = vst.msk [vmem:[#allocation3 + $0x10] sm:$0xff] %vm351_vm2, %v1876_v26  ;;  %v1877_v42 = vadd.f32 %v3184_v35, %v1869_v62  ;;  %v1867_v43 = vld [vmem:[#allocation3 + $0x8] sm:$0xff]  ;;  %1771 = vst.msk [vmem:[#allocation3 + $0x38] sm:$0xff] %vm351_vm2, %v1763_v30 }
 0x27f   : > { %1882 = vst.msk [vmem:[#allocation3] sm:$0xff] %vm351_vm2, %v1874_v32  ;;  %v1875_v44 = vadd.f32 %v1867_v43, %v1838_v57  ;;  %1769 = vst.msk [vmem:[#allocation3 + $0x28] sm:$0xff] %vm351_vm2, %v1761_v33  ;;  %v3193_v45 = vpop.f32.mrb[52].mxu1 }
 0x280   : > { %v3203_v50 = vpop.f32.mrb[52].mxu0  ;;  %1885 = vst.msk [vmem:[#allocation3 + $0x18] sm:$0xff] %vm351_vm2, %v1877_v42  ;;  %v1953_v49 = vpop.f32.mrb[53].mxu1 }
 0x281   : > { %v2071_v51 = vpop.f32.mrb[53].mxu0  ;;  %1883 = vst.msk [vmem:[#allocation3 + $0x8] sm:$0xff] %vm351_vm2, %v1875_v44  ;;  %v3194_v52 = vpop.f32.mrb[54].mxu1 }
 0x282   : > { %v3204_v53 = vpop.f32.mrb[54].mxu0  ;;  %v1956_v54 = vpop.f32.mrb[55].mxu1 }
 0x283   : > { %v2074_v55 = vpop.f32.mrb[55].mxu0  ;;  %v1872_v56 = vld [vmem:[#allocation3 + $0x30] sm:$0xff] }
 0x284   : > { %v1880_v59 = vadd.f32 %v3187_v41, %v1872_v56  ;;  %v1870_v60 = vld [vmem:[#allocation3 + $0x20] sm:$0xff] }
 0x285   : > { %v1878_v61 = vadd.f32 %v1870_v60, %v1851_v8  ;;  %v1873_v1 = vld [vmem:[#allocation3 + $0x38] sm:$0xff]  ;;  %v1986_v2 = vld [vmem:[#allocation3 + $0x10] sm:$0xff] }
 0x286   : > { %1888 = vst.msk [vmem:[#allocation3 + $0x30] sm:$0xff] %vm351_vm2, %v1880_v59  ;;  %v1881_v3 = vadd.f32 %v3188_v6, %v1873_v1  ;;  %v1871_v4 = vld [vmem:[#allocation3 + $0x28] sm:$0xff]  ;;  %v1994_v7 = vadd.f32 %v3193_v45, %v1986_v2  ;;  %v1984_v11 = vld [vmem:[#allocation3] sm:$0xff] }
 0x287   : > { %1886 = vst.msk [vmem:[#allocation3 + $0x20] sm:$0xff] %vm351_vm2, %v1878_v61  ;;  %v1879_v12 = vadd.f32 %v1871_v4, %v1854_v23  ;;  %v1992_v15 = vadd.f32 %v1984_v11, %v1953_v49  ;;  %v1987_v16 = vld [vmem:[#allocation3 + $0x18] sm:$0xff]  ;;  %v3197_v17 = vpop.f32.mrb[56].mxu1 }
 0x288   : > { %v3207_v18 = vpop.f32.mrb[56].mxu0  ;;  %1889 = vst.msk [vmem:[#allocation3 + $0x38] sm:$0xff] %vm351_vm2, %v1881_v3  ;;  %2002 = vst.msk [vmem:[#allocation3 + $0x10] sm:$0xff] %vm351_vm2, %v1994_v7  ;;  %v1995_v20 = vadd.f32 %v3194_v52, %v1987_v16  ;;  %v1985_v21 = vld [vmem:[#allocation3 + $0x8] sm:$0xff]  ;;  %v1969_v22 = vpop.f32.mrb[57].mxu1 }
 0x289   : > { %v2087_v34 = vpop.f32.mrb[57].mxu0  ;;  %1887 = vst.msk [vmem:[#allocation3 + $0x28] sm:$0xff] %vm351_vm2, %v1879_v12  ;;  %2000 = vst.msk [vmem:[#allocation3] sm:$0xff] %vm351_vm2, %v1992_v15  ;;  %v1993_v35 = vadd.f32 %v1985_v21, %v1956_v54  ;;  %v3198_v36 = vpop.f32.mrb[58].mxu1 }
 0x28a   : > { %v3208_v58 = vpop.f32.mrb[58].mxu0  ;;  %2003 = vst.msk [vmem:[#allocation3 + $0x18] sm:$0xff] %vm351_vm2, %v1995_v20  ;;  %v1972_v37 = vpop.f32.mrb[59].mxu1 }
 0x28b   : > { %v2090_v0 = vpop.f32.mrb[59].mxu0  ;;  %2001 = vst.msk [vmem:[#allocation3 + $0x8] sm:$0xff] %vm351_vm2, %v1993_v35 }
 0x28d   : > { %v1990_v5 = vld [vmem:[#allocation3 + $0x30] sm:$0xff] }
 0x28e   : > { %v1998_v57 = vadd.f32 %v3197_v17, %v1990_v5  ;;  %v1988_v38 = vld [vmem:[#allocation3 + $0x20] sm:$0xff] }
 0x28f   : > { %v2104_v63 = vld [vmem:[#allocation3 + $0x10] sm:$0xff]  ;;  %v1996_v40 = vadd.f32 %v1988_v38, %v1969_v22  ;;  %v1991_v24 = vld [vmem:[#allocation3 + $0x38] sm:$0xff]  ;;  %v3213_v27 = vpop.f32.mrb[60].mxu1 }
 0x290   : > { %v4077_v9 = vpop.f32.mrb[60].mxu0  ;;  %v2112_v39 = vadd.f32 %v3203_v50, %v2104_v63  ;;  %v2102_v41 = vld [vmem:[#allocation3] sm:$0xff]  ;;  %2006 = vst.msk [vmem:[#allocation3 + $0x30] sm:$0xff] %vm351_vm2, %v1998_v57  ;;  %v1999_v10 = vadd.f32 %v3198_v36, %v1991_v24  ;;  %v1989_v8 = vld [vmem:[#allocation3 + $0x28] sm:$0xff]  ;;  %v2190_v13 = vpop.f32.mrb[61].mxu1 }
 0x291   : > { %v4080_v46 = vpop.f32.mrb[61].mxu0  ;;  %v2110_v6 = vadd.f32 %v2102_v41, %v2071_v51  ;;  %v2105_v47 = vld [vmem:[#allocation3 + $0x18] sm:$0xff]  ;;  %2004 = vst.msk [vmem:[#allocation3 + $0x20] sm:$0xff] %vm351_vm2, %v1996_v40  ;;  %v1997_v48 = vadd.f32 %v1989_v8, %v1972_v37  ;;  %v3214_v14 = vpop.f32.mrb[62].mxu1 }
 0x292   : > { %v4083_v23 = vpop.f32.mrb[62].mxu0  ;;  %2120 = vst.msk [vmem:[#allocation3 + $0x10] sm:$0xff] %vm351_vm2, %v2112_v39  ;;  %v2113_v19 = vadd.f32 %v3204_v53, %v2105_v47  ;;  %v2103_v25 = vld [vmem:[#allocation3 + $0x8] sm:$0xff]  ;;  %2007 = vst.msk [vmem:[#allocation3 + $0x38] sm:$0xff] %vm351_vm2, %v1999_v10  ;;  %v2193_v28 = vpop.f32.mrb[63].mxu1 }
 0x293   : > { %v4087_v26 = vpop.f32.mrb[63].mxu0  ;;  %2118 = vst.msk [vmem:[#allocation3] sm:$0xff] %vm351_vm2, %v2110_v6  ;;  %v2111_v29 = vadd.f32 %v2103_v25, %v2074_v55  ;;  %2005 = vst.msk [vmem:[#allocation3 + $0x28] sm:$0xff] %vm351_vm2, %v1997_v48 }
 0x294   : > { %2121 = vst.msk [vmem:[#allocation3 + $0x18] sm:$0xff] %vm351_vm2, %v2113_v19 }
 0x295   : > { %2119 = vst.msk [vmem:[#allocation3 + $0x8] sm:$0xff] %vm351_vm2, %v2111_v29 }
 0x297   : > { %v2108_v30 = vld [vmem:[#allocation3 + $0x30] sm:$0xff]  ;;  %v3217_v31 = vpop.f32.mrb[64].mxu1 }
 0x298   : > { %v4093_v32 = vpop.f32.mrb[64].mxu0  ;;  %v2116_v62 = vadd.f32 %v3207_v18, %v2108_v30  ;;  %v2106_v33 = vld [vmem:[#allocation3 + $0x20] sm:$0xff]  ;;  %v2206_v42 = vpop.f32.mrb[65].mxu1 }
 0x299   : > { %v4095_v43 = vpop.f32.mrb[65].mxu0  ;;  %v2114_v44 = vadd.f32 %v2106_v33, %v2087_v34  ;;  %v2109_v45 = vld [vmem:[#allocation3 + $0x38] sm:$0xff]  ;;  %v2223_v50 = vld [vmem:[#allocation3 + $0x10] sm:$0xff]  ;;  %v3218_v49 = vpop.f32.mrb[66].mxu1 }
 0x29a   : > { %v4097_v51 = vpop.f32.mrb[66].mxu0  ;;  %2124 = vst.msk [vmem:[#allocation3 + $0x30] sm:$0xff] %vm351_vm2, %v2116_v62  ;;  %v2117_v52 = vadd.f32 %v3208_v58, %v2109_v45  ;;  %v2107_v53 = vld [vmem:[#allocation3 + $0x28] sm:$0xff]  ;;  %v2231_v54 = vadd.f32 %v3213_v27, %v2223_v50  ;;  %v2221_v55 = vld [vmem:[#allocation3] sm:$0xff]  ;;  %v2209_v56 = vpop.f32.mrb[67].mxu1 }
 0x29b   : > { %v4100_v59 = vpop.f32.mrb[67].mxu0  ;;  %2122 = vst.msk [vmem:[#allocation3 + $0x20] sm:$0xff] %vm351_vm2, %v2114_v44  ;;  %v2115_v60 = vadd.f32 %v2107_v53, %v2090_v0  ;;  %v2229_v61 = vadd.f32 %v2221_v55, %v2190_v13  ;;  %v2224_v1 = vld [vmem:[#allocation3 + $0x18] sm:$0xff] }
 0x29c   : > { %2125 = vst.msk [vmem:[#allocation3 + $0x38] sm:$0xff] %vm351_vm2, %v2117_v52  ;;  %2239 = vst.msk [vmem:[#allocation3 + $0x10] sm:$0xff] %vm351_vm2, %v2231_v54  ;;  %v2232_v2 = vadd.f32 %v3214_v14, %v2224_v1  ;;  %v2222_v3 = vld [vmem:[#allocation3 + $0x8] sm:$0xff] }
 0x29d   : > { %2123 = vst.msk [vmem:[#allocation3 + $0x28] sm:$0xff] %vm351_vm2, %v2115_v60  ;;  %2237 = vst.msk [vmem:[#allocation3] sm:$0xff] %vm351_vm2, %v2229_v61  ;;  %v2230_v4 = vadd.f32 %v2222_v3, %v2193_v28 }
 0x29e   : > { %2240 = vst.msk [vmem:[#allocation3 + $0x18] sm:$0xff] %vm351_vm2, %v2232_v2 }
 0x29f   : > { %2238 = vst.msk [vmem:[#allocation3 + $0x8] sm:$0xff] %vm351_vm2, %v2230_v4  ;;  %v3233_v7 = vpop.f32.mrb[68].mxu1 }
 0x2a0   : > { %v4109_v11 = vpop.f32.mrb[68].mxu0  ;;  %v2426_v12 = vpop.f32.mrb[69].mxu1 }
 0x2a1   : > { %v4111_v15 = vpop.f32.mrb[69].mxu0  ;;  %v2227_v16 = vld [vmem:[#allocation3 + $0x30] sm:$0xff]  ;;  %v3234_v17 = vpop.f32.mrb[70].mxu1 }
 0x2a2   : > { %v4113_v18 = vpop.f32.mrb[70].mxu0  ;;  %v2235_v20 = vadd.f32 %v3217_v31, %v2227_v16  ;;  %v2225_v21 = vld [vmem:[#allocation3 + $0x20] sm:$0xff]  ;;  %v2429_v22 = vpop.f32.mrb[71].mxu1 }
 0x2a3   : > { %v4115_v34 = vpop.f32.mrb[71].mxu0  ;;  %v2341_v35 = vld [vmem:[#allocation3 + $0x10] sm:$0xff]  ;;  %v2233_v36 = vadd.f32 %v2225_v21, %v2206_v42  ;;  %v2228_v58 = vld [vmem:[#allocation3 + $0x38] sm:$0xff] }
 0x2a4   : > { %v2349_v37 = vadd.f32 %v4077_v9, %v2341_v35  ;;  %v2339_v0 = vld [vmem:[#allocation3] sm:$0xff]  ;;  %2243 = vst.msk [vmem:[#allocation3 + $0x30] sm:$0xff] %vm351_vm2, %v2235_v20  ;;  %v2236_v5 = vadd.f32 %v3218_v49, %v2228_v58  ;;  %v2226_v57 = vld [vmem:[#allocation3 + $0x28] sm:$0xff] }
 0x2a5   : > { %v2347_v38 = vadd.f32 %v2339_v0, %v4080_v46  ;;  %v2342_v63 = vld [vmem:[#allocation3 + $0x18] sm:$0xff]  ;;  %2241 = vst.msk [vmem:[#allocation3 + $0x20] sm:$0xff] %vm351_vm2, %v2233_v36  ;;  %v2234_v40 = vadd.f32 %v2226_v57, %v2209_v56 }
 0x2a6   : > { %2357 = vst.msk [vmem:[#allocation3 + $0x10] sm:$0xff] %vm351_vm2, %v2349_v37  ;;  %v2350_v24 = vadd.f32 %v4083_v23, %v2342_v63  ;;  %v2340_v27 = vld [vmem:[#allocation3 + $0x8] sm:$0xff]  ;;  %2244 = vst.msk [vmem:[#allocation3 + $0x38] sm:$0xff] %vm351_vm2, %v2236_v5 }
 0x2a7   : > { %2355 = vst.msk [vmem:[#allocation3] sm:$0xff] %vm351_vm2, %v2347_v38  ;;  %v2348_v9 = vadd.f32 %v2340_v27, %v4087_v26  ;;  %2242 = vst.msk [vmem:[#allocation3 + $0x28] sm:$0xff] %vm351_vm2, %v2234_v40  ;;  %v3237_v39 = vpop.f32.mrb[72].mxu1 }
 0x2a8   : > { %v4127_v41 = vpop.f32.mrb[72].mxu0  ;;  %2358 = vst.msk [vmem:[#allocation3 + $0x18] sm:$0xff] %vm351_vm2, %v2350_v24  ;;  %v2442_v10 = vpop.f32.mrb[73].mxu1 }
 0x2a9   : > { %v4130_v8 = vpop.f32.mrb[73].mxu0  ;;  %2356 = vst.msk [vmem:[#allocation3 + $0x8] sm:$0xff] %vm351_vm2, %v2348_v9  ;;  %v3238_v13 = vpop.f32.mrb[74].mxu1 }
 0x2aa   : > { %v4133_v46 = vpop.f32.mrb[74].mxu0  ;;  %v2445_v6 = vpop.f32.mrb[75].mxu1 }
 0x2ab   : > { %v4135_v47 = vpop.f32.mrb[75].mxu0  ;;  %v2345_v48 = vld [vmem:[#allocation3 + $0x30] sm:$0xff] }
 0x2ac   : > { %v2353_v14 = vadd.f32 %v4093_v32, %v2345_v48  ;;  %v2343_v23 = vld [vmem:[#allocation3 + $0x20] sm:$0xff] }
 0x2ad   : > { %v2351_v19 = vadd.f32 %v2343_v23, %v4095_v43  ;;  %v2346_v25 = vld [vmem:[#allocation3 + $0x38] sm:$0xff]  ;;  %v2459_v28 = vld [vmem:[#allocation3 + $0x10] sm:$0xff] }
 0x2ae   : > { %2361 = vst.msk [vmem:[#allocation3 + $0x30] sm:$0xff] %vm351_vm2, %v2353_v14  ;;  %v2354_v26 = vadd.f32 %v4097_v51, %v2346_v25  ;;  %v2344_v29 = vld [vmem:[#allocation3 + $0x28] sm:$0xff]  ;;  %v2467_v30 = vadd.f32 %v3233_v7, %v2459_v28  ;;  %v2457_v31 = vld [vmem:[#allocation3] sm:$0xff] }
 0x2af   : > { %2359 = vst.msk [vmem:[#allocation3 + $0x20] sm:$0xff] %vm351_vm2, %v2351_v19  ;;  %v2352_v62 = vadd.f32 %v2344_v29, %v4100_v59  ;;  %v2465_v33 = vadd.f32 %v2457_v31, %v2426_v12  ;;  %v2460_v42 = vld [vmem:[#allocation3 + $0x18] sm:$0xff] }
 0x2b0   : > { %2362 = vst.msk [vmem:[#allocation3 + $0x38] sm:$0xff] %vm351_vm2, %v2354_v26  ;;  %2475 = vst.msk [vmem:[#allocation3 + $0x10] sm:$0xff] %vm351_vm2, %v2467_v30  ;;  %v2468_v32 = vadd.f32 %v3234_v17, %v2460_v42  ;;  %v2458_v43 = vld [vmem:[#allocation3 + $0x8] sm:$0xff] }
 0x2b1   : > { %2360 = vst.msk [vmem:[#allocation3 + $0x28] sm:$0xff] %vm351_vm2, %v2352_v62  ;;  %2473 = vst.msk [vmem:[#allocation3] sm:$0xff] %vm351_vm2, %v2465_v33  ;;  %v2466_v44 = vadd.f32 %v2458_v43, %v2429_v22 }
 0x2b2   : > { %2476 = vst.msk [vmem:[#allocation3 + $0x18] sm:$0xff] %vm351_vm2, %v2468_v32 }
 0x2b3   : > { %2474 = vst.msk [vmem:[#allocation3 + $0x8] sm:$0xff] %vm351_vm2, %v2466_v44 }
 0x2b5   : > { %v2463_v45 = vld [vmem:[#allocation3 + $0x30] sm:$0xff] }
 0x2b6   : > { %v2471_v50 = vadd.f32 %v3237_v39, %v2463_v45  ;;  %v2461_v49 = vld [vmem:[#allocation3 + $0x20] sm:$0xff] }
 0x2b7   : > { %v2469_v51 = vadd.f32 %v2461_v49, %v2442_v10  ;;  %v2464_v52 = vld [vmem:[#allocation3 + $0x38] sm:$0xff]  ;;  %v4152_v56 = vld [vmem:[#allocation3 + $0x10] sm:$0xff] }
 0x2b8   : > { %2479 = vst.msk [vmem:[#allocation3 + $0x30] sm:$0xff] %vm351_vm2, %v2471_v50  ;;  %v2472_v53 = vadd.f32 %v3238_v13, %v2464_v52  ;;  %v2462_v54 = vld [vmem:[#allocation3 + $0x28] sm:$0xff]  ;;  %v4150_v55 = vld [vmem:[#allocation3] sm:$0xff]  ;;  %v2513_v7 = vmul.f32 %v4152_v56, %v4152_v56  ;;  %v2492_v16 = vsel %vm351_vm2, %v4152_v56, 0.0 }
 0x2b9   : > { %2477 = vst.msk [vmem:[#allocation3 + $0x20] sm:$0xff] %vm351_vm2, %v2469_v51  ;;  %v2470_v59 = vadd.f32 %v2462_v54, %v2445_v6  ;;  %v2511_v60 = vmul.f32 %v4150_v55, %v4150_v55  ;;  %v4157_v61 = vld [vmem:[#allocation3 + $0x18] sm:$0xff]  ;;  %v2489_v2 = vsel %vm351_vm2, %v4150_v55, 0.0 }
 0x2ba   : > { %2480 = vst.msk [vmem:[#allocation3 + $0x38] sm:$0xff] %vm351_vm2, %v2472_v53  ;;  %v4160_v1 = vld [vmem:[#allocation3 + $0x8] sm:$0xff]  ;;  %v2514_v17 = vmul.f32 %v4157_v61, %v4157_v61  ;;  %v2494_v36 = vsel %vm351_vm2, %v4157_v61, 0.0  ;;  %v2522_v58 = vsel %vm351_vm2, %v2513_v7, 0.0 }
 0x2bb   : > { %2478 = vst.msk [vmem:[#allocation3 + $0x28] sm:$0xff] %vm351_vm2, %v2470_v59  ;;  %v2490_v3 = vsel %vm351_vm2, %v4160_v1, 0.0  ;;  %v2512_v4 = vmul.f32 %v4160_v1, %v4160_v1  ;;  %v2519_v20 = vsel %vm351_vm2, %v2511_v60, 0.0 }
 0x2bc   : > { %v2491_v12 = vadd.f32 %v2490_v3, %v2489_v2  ;;  %v2524_v40 = vsel %vm351_vm2, %v2514_v17, 0.0  ;;  %v2956_v17 = vld [vmem:[%s4300_s4] ss:$0 sm:$0xff] }
 0x2bd   : > { %v2520_v21 = vsel %vm351_vm2, %v2512_v4, 0.0 }
 0x2be   : > { %v2493_v22 = vadd.f32 %v2492_v16, %v2491_v12  ;;  %v2521_v35 = vadd.f32 %v2520_v21, %v2519_v20  ;;  %v2663_v20 = vmul.f32 %v4109_v11, %v2956_v17  ;;  %v2661_v21 = vmul.f32 %v2956_v17, %v4111_v15 }
 0x2bf   : > { %v4180_v37 = vld [vmem:[#allocation3 + $0x30] sm:$0xff] }
 0x2c0   : > { %v4182_v0 = vld [vmem:[#allocation3 + $0x20] sm:$0xff]  ;;  %v2495_v5 = vadd.f32 %v2494_v36, %v2493_v22  ;;  %v2523_v57 = vadd.f32 %v2522_v58, %v2521_v35  ;;  %v2517_v6 = vmul.f32 %v4180_v37, %v4180_v37  ;;  %v2500_v19 = vsel %vm351_vm2, %v4180_v37, 0.0 }
 0x2c1   : > { %v2496_v38 = vsel %vm351_vm2, %v4182_v0, 0.0  ;;  %v2515_v63 = vmul.f32 %v4182_v0, %v4182_v0  ;;  %v4189_v24 = vld [vmem:[#allocation3 + $0x38] sm:$0xff]  ;;  %v2664_v22 = vmul.f32 %v4113_v18, %v2956_v17  ;;  %v2662_v35 = vmul.f32 %v2956_v17, %v4115_v34  ;;  %v2957_v36 = vld [vmem:[%s4301_s5] ss:$0 sm:$0xff] }
 0x2c2   : > { %v4191_v27 = vld [vmem:[#allocation3 + $0x28] sm:$0xff]  ;;  %v2497_v9 = vadd.f32 %v2496_v38, %v2495_v5  ;;  %v2525_v39 = vadd.f32 %v2524_v40, %v2523_v57  ;;  %v2518_v25 = vmul.f32 %v4189_v24, %v4189_v24  ;;  %v2502_v30 = vsel %vm351_vm2, %v4189_v24, 0.0 }
 0x2c3   : > { %v2498_v10 = vsel %vm351_vm2, %v4191_v27, 0.0  ;;  %v2516_v13 = vmul.f32 %v4191_v27, %v4191_v27  ;;  %v2526_v48 = vsel %vm351_vm2, %v2515_v63, 0.0  ;;  %v2530_v31 = vsel %vm351_vm2, %v2517_v6, 0.0 }
 0x2c4   : > { %v2499_v14 = vadd.f32 %v2498_v10, %v2497_v9  ;;  %v2527_v23 = vadd.f32 %v2526_v48, %v2525_v39  ;;  %v2532_v42 = vsel %vm351_vm2, %v2518_v25, 0.0  ;;  %v2667_v58 = vmul.f32 %v4127_v41, %v2956_v17 }
 0x2c5   : > { %v2528_v28 = vsel %vm351_vm2, %v2516_v13, 0.0  ;;  %v2665_v5 = vmul.f32 %v2956_v17, %v4130_v8  ;;  %v2668_v57 = vmul.f32 %v4133_v46, %v2956_v17  ;;  %v2666_v38 = vmul.f32 %v2956_v17, %v4135_v47 }
 0x2c6   : > { %v2501_v26 = vadd.f32 %v2500_v19, %v2499_v14  ;;  %v2529_v29 = vadd.f32 %v2528_v28, %v2527_v23  ;;  %v2678_v11 = vadd.f32 %v2957_v36, %v2663_v20  ;;  %v2676_v63 = vadd.f32 %v2957_v36, %v2661_v21 }
 0x2c7   : > { %v2679_v15 = vadd.f32 %v2957_v36, %v2664_v22  ;;  %v2677_v40 = vadd.f32 %v2957_v36, %v2662_v35  ;;  %v2682_v18 = vadd.f32 %v2957_v36, %v2667_v58  ;;  %v2680_v34 = vadd.f32 %v2957_v36, %v2665_v5 }
 0x2c8   : > { %v2503_v62 = vadd.f32 %v2502_v30, %v2501_v26  ;;  %v2531_v33 = vadd.f32 %v2530_v31, %v2529_v29  ;;  %v2683_v9 = vadd.f32 %v2957_v36, %v2668_v57  ;;  %v2681_v39 = vadd.f32 %v2957_v36, %v2666_v38 }
 0x2ca   : > { %v2504_v32 = vrot.slane %v2503_v62, 4  ;;  %v2533_v43 = vadd.f32 %v2532_v42, %v2531_v33 }
 0x2cc   : > { %v2505_v44 = vadd.f32 %v2504_v32, %v2503_v62  ;;  %v2534_v45 = vrot.slane %v2533_v43, 4 }
 0x2ce   : > { %v2506_v50 = vrot.slane %v2505_v44, 2  ;;  %v2535_v49 = vadd.f32 %v2534_v45, %v2533_v43 }
 0x2d0   : > { %v2507_v51 = vadd.f32 %v2506_v50, %v2505_v44  ;;  %v2536_v52 = vrot.slane %v2535_v49, 2 }
 0x2d2   : > { %v2508_v53 = vrot.slane %v2507_v51, 1  ;;  %v2537_v54 = vadd.f32 %v2536_v52, %v2535_v49 }
 0x2d4   : > { %v2509_v59 = vadd.f32 %v2508_v53, %v2507_v51  ;;  %v2538_v60 = vrot.slane %v2537_v54, 1 }
 0x2d6   : > { %v2510_v2 = vmul.f32 0.015625, %v2509_v59  ;;  %v2539_v3 = vadd.f32 %v2538_v60, %v2537_v54 }
 0x2d8   : > { %v2540_v4 = vmul.f32 0.015625, %v2539_v3  ;;  %v2541_v7 = vmul.f32 %v2510_v2, %v2510_v2  ;;  %v2545_v41 = vsub.f32 %v4152_v56, %v2510_v2  ;;  %v2543_v8 = vsub.f32 %v4150_v55, %v2510_v2 }
 0x2d9   : > { %v2546_v46 = vsub.f32 %v4157_v61, %v2510_v2  ;;  %v2544_v47 = vsub.f32 %v4160_v1, %v2510_v2  ;;  %v2549_v13 = vsub.f32 %v4180_v37, %v2510_v2  ;;  %v2547_v6 = vsub.f32 %v4182_v0, %v2510_v2 }
 0x2da   : > { %v2542_v12 = vsub.f32 %v2540_v4, %v2541_v7  ;;  %v2550_v48 = vsub.f32 %v4189_v24, %v2510_v2  ;;  %v2548_v14 = vsub.f32 %v4191_v27, %v2510_v2 }
 0x2dc   : > { %v2551_v16 = vadd.f32 1e-05, %v2542_v12 }
 0x2de   : > { %3316 = vrsqrt.f32 %v2551_v16 }
 0x2e8   : > { %v3317_v10 = vpop.eup %3316 }
 0x2e9   : > { %v2555_v23 = vmul.f32 %v3317_v10, %v2545_v41  ;;  %v2553_v19 = vmul.f32 %v3317_v10, %v2543_v8  ;;  %v2556_v56 = vmul.f32 %v3317_v10, %v2546_v46  ;;  %v2554_v25 = vmul.f32 %v3317_v10, %v2544_v47 }
 0x2ea   : > { %v2559_v55 = vmul.f32 %v3317_v10, %v2549_v13  ;;  %v2557_v28 = vmul.f32 %v3317_v10, %v2547_v6  ;;  %v2560_v61 = vmul.f32 %v3317_v10, %v2550_v48  ;;  %v2558_v26 = vmul.f32 %v3317_v10, %v2548_v14 }
 0x2eb   : > { %v2686_v1 = vadd.f32 %v2678_v11, %v2555_v23  ;;  %v2684_v29 = vadd.f32 %v2676_v63, %v2553_v19  ;;  %v2687_v30 = vadd.f32 %v2679_v15, %v2556_v56  ;;  %v2685_v37 = vadd.f32 %v2677_v40, %v2554_v25 }
 0x2ec   : > { %v2690_v31 = vadd.f32 %v2682_v18, %v2559_v55  ;;  %v2688_v0 = vadd.f32 %v2680_v34, %v2557_v28  ;;  %v2691_v62 = vadd.f32 %v2683_v9, %v2560_v61  ;;  %v2689_v24 = vadd.f32 %v2681_v39, %v2558_v26 }
 0x2ed   : > { %v2694_v27 = vmax.f32 %v2686_v1, 0.0  ;;  %v2692_v33 = vmax.f32 %v2684_v29, 0.0  ;;  %v2695_v42 = vmax.f32 %v2687_v30, 0.0  ;;  %v2693_v32 = vmax.f32 %v2685_v37, 0.0 }
 0x2ee   : > { %v2698_v43 = vmax.f32 %v2690_v31, 0.0  ;;  %v2696_v44 = vmax.f32 %v2688_v0, 0.0  ;;  %v2699_v45 = vmax.f32 %v2691_v62, 0.0  ;;  %v2697_v50 = vmax.f32 %v2689_v24, 0.0 }
 0x2ef   : > { %v2702_v49 = vpack.c.bf16 %v2694_v27, %v2694_v27  ;;  %v2700_v51 = vpack.c.bf16 %v2692_v33, %v2692_v33  ;;  %v2703_v52 = vpack.c.bf16 %v2695_v42, %v2695_v42  ;;  %v2701_v53 = vpack.c.bf16 %v2693_v32, %v2693_v32 }
 0x2f0   : > { %v2706_v54 = vpack.c.bf16 %v2698_v43, %v2698_v43  ;;  %v2704_v59 = vpack.c.bf16 %v2696_v44, %v2696_v44  ;;  %v2707_v60 = vpack.c.bf16 %v2699_v45, %v2699_v45  ;;  %v2705_v2 = vpack.c.bf16 %v2697_v50, %v2697_v50 }
 0x2f1   : > { %2711 = vst.msk [vmem:[%s247_s15 + $0x8] sm:$0xf] %vm2708_vm6, %v2702_v49  ;;  %2709 = vst.msk [vmem:[%s247_s15] sm:$0xf] %vm2708_vm6, %v2700_v51 }
 0x2f2   : > { %2712 = vst.msk [vmem:[%s247_s15 + $0xc] sm:$0xf] %vm2708_vm6, %v2703_v52  ;;  %2710 = vst.msk [vmem:[%s247_s15 + $0x4] sm:$0xf] %vm2708_vm6, %v2701_v53 }
 0x2f3   : > { %2715 = vst.msk [vmem:[%s247_s15 + $0x18] sm:$0xf] %vm2708_vm6, %v2706_v54  ;;  %2713 = vst.msk [vmem:[%s247_s15 + $0x10] sm:$0xf] %vm2708_vm6, %v2704_v59 }
 0x2f4   : > { %2716 = vst.msk [vmem:[%s247_s15 + $0x1c] sm:$0xf] %vm2708_vm6, %v2707_v60  ;;  %2714 = vst.msk [vmem:[%s247_s15 + $0x14] sm:$0xf] %vm2708_vm6, %v2705_v2 }
 0x2f5   : > { %3331 = shalt.err (!%p3328_p3)
}
 0x2f6   : > { %s3332_s9 = scalar_lea.hbm %s4241_s20, 512  ;;  %s3336_s12 = scalar_lea.hbm %s4302_s6, 1024 }
 0x2f7   : > { %p3333_p4 = scmp.ne.s32.totalorder %s4241_s20, %s3332_s9  ;;  %p3337_p9 = scmp.lt.u32.totalorder %s4241_s20, %s4302_s6 }
 0x2f8   : > { %p3338_p10 = scmp.lt.u32.totalorder %s3336_s12, %s3332_s9  ;;  %p3340_p12 = scmp.lt.u32.totalorder %s3332_s9, %s4241_s20 }
 0x2f9   : > { %p3334_p7 = pnand %p3333_p4, %p3459_p5 }
 0x2fa   : > { %p3339_p11 = por %p3338_p10, %p3337_p9 }
 0x2fb   : > { %p3335_p8 = pneg %p3334_p7 }
 0x2fc   : > { %p3341_p13 = por %p3340_p12, %p3339_p11 }
 0x2fe   : > { %p3342_p0 = pnand %p3341_p13, %p3335_p8 }
 0x300   : > { %3345 = shalt.err (!%p3342_p0)
}
 0x301   : > { %s3384_s15 = smov 64   ;;  %s3385_s17 = smov 4  }
 0x302   : > { %3272 = dma.vmem_to_hbm [thread:$0]  (%p3459_p5), %s4243_s16, 512, %s4241_s20, %s4255_s25, %s3384_s15, %s3384_s15, %s3385_s17  }
 0x303 PF: > { %p3278_p1 = scmp.ge.s32.totalorder %s3380_s24, 2  ;;  %s2746_s18 = sand.u32 1, %s3368_s21  }
 0x304   : > { %s2747_s26 = scalar_lea.sflag [#allocation5], %s2746_s18 }
 0x305   : > { %p3275_p2 = pnand %p3278_p1, %p3463_p6 }
 0x307   : > { %3363 = dma.done.wait (!%p3275_p2), %s2747_s26, 512  }
 0x308   : > { %3365 = vsyncadd (!%p3275_p2), %s2747_s26, 4294966784  ;;  %p16_p3 = scmp.ge.s32.totalorder %s3446_s27, 4   ;;  %s4305_s21 = smov %s3372_s22 }
 0x309   : > { %s4306_s22 = smov %s3376_s23  ;;  %s4307_s23 = smov %s3457_s30 }
 0x30a   : > { %s4308_s24 = smov %s3446_s27  ;;  %18 = sbr.rel (!%p16_p3) target bundleno = 3 (0x3), region = 103 }
 0x311   :  { %2752 = vsyncpa [#allocation5], 1 }
 0x312   :  { %2754 = vsyncpa [#allocation5 + $0x1], 1 }

</bundles_post_ra>
